<compile_context>
chip_gen: v7x
topology: tpu7x:2x2x1
jax: 0.10.0
libtpu: 0.0.40
codegen_flags: <defaults>
</compile_context>

<pallas_src>
import functools

import jax
import jax.numpy as jnp
from jax import lax
from jax.experimental import pallas as pl
from jax.experimental.pallas import tpu as pltpu


def _round_up(x, m):
    return ((x + m - 1) // m) * m


# --------------------------------------------------------------------------
# Fused Pallas kernel: BB images per grid step, everything stays in VMEM
# --------------------------------------------------------------------------

def _cnn1_fused_kernel(x_ref, w1b_ref, b1v_ref, w2b_ref, b2v_ref, wl_ref, blv_ref, mask_ref,
                       o_ref, xpad_ref, y1p_ref, *,
                       bb, img, pad, kw1, c1, h1, kw2, c2, h2, wpad, nl):
    """Layout: batch is interleaved on lanes with per-image stride Wpad; H lives in the
    (banded) weight rows, so every conv becomes a single MXU matmul per grid step."""
    f32 = jnp.float32

    # ---- zero-padded input: (Hpad_rows, BB*Wpad lanes) -------------------------------------
    xpad_ref[...] = jnp.zeros_like(xpad_ref)
    for b in range(bb):                                    # one small interior store / image
        lo = b * wpad + pad
        xpad_ref[pad:pad + img, lo:lo + img] = x_ref[b]

    # ---- conv1 + ReLU: ONE matmul -----------------------------------------------------------
    # Xstack rows are (kw, h): kw1 lane-shifted copies of the padded input, concatenated at
    # 8-aligned sublane offsets (each slice starts at sublane 0 -> no misaligned slabs).
    xstack = jnp.concatenate([xpad_ref[:, kw:kw + nl] for kw in range(kw1)], axis=0)
    y1 = jnp.dot(w1b_ref[...], xstack, preferred_element_type=f32) + b1v_ref[...]
    y1p_ref[:, :nl] = jnp.maximum(y1, 0.0)                 # rows (c, i), cols (b, j)
    y1p_ref[:, nl:] = jnp.zeros((c1 * h1, y1p_ref.shape[1] - nl), f32)

    # ---- conv2 (no ReLU in forward): ONE matmul ---------------------------------------------
    # Y1stack rows are (kw, c, i'): kw2 lane-shifted copies of the conv1 output.
    y1stack = jnp.concatenate([y1p_ref[:, kw:kw + nl] for kw in range(kw2)], axis=0)
    y2 = jnp.dot(w2b_ref[...], y1stack, preferred_element_type=f32) + b2v_ref[...]  # (c2*h2, nl)

    # ---- MaxPool2d(8) == max over the whole 8x8 conv2 map (asserted in wrapper) -------------
    valid = mask_ref[...] > 0.5                            # (1, nl): column j < w2 of each image
    y2m = jnp.where(valid, y2, -jnp.inf)
    y2m = y2m[:, :bb * wpad]
    y2m = jnp.max(y2m.reshape(c2, h2, bb * wpad), axis=1)  # max over output rows i2
    pooled = jnp.max(y2m.reshape(c2, bb, wpad), axis=-1)   # max over output cols j -> (c2, bb)

    # ---- 4x4 linear on the VPU (avoid a trailing MXU push/drain) ----------------------------
    acc = blv_ref[...]                                     # (n_out, 1)
    for c in range(c2):
        acc = acc + wl_ref[:, c:c + 1] * pooled[c:c + 1, :]

    # ---- lane-dense output store ------------------------------------------------------------
    o_ref[0] = jnp.zeros((o_ref.shape[1], o_ref.shape[2]), f32)
    o_ref[0, :, :bb] = acc


# --------------------------------------------------------------------------
# Wrapper: banded-weight packing + single pallas_call
# --------------------------------------------------------------------------

def cnn1_forward(x, params, img_size, *, batch_block=None):
    """x: (B, img_size*img_size) float32 -> (B, n_out) float32."""
    f32 = jnp.float32
    w1, b1 = params["w1"], params["b1"]       # (KH1, KW1, 1, C1) HWIO, (C1,)
    w2, b2 = params["w2"], params["b2"]       # (KH2, KW2, C1, C2) HWIO, (C2,)
    wl, bl = params["wl"], params["bl"]       # (n_out, n_in), (n_out,)

    kh1, kw1, cin, c1 = w1.shape
    kh2, kw2, c1b, c2 = w2.shape
    assert cin == 1 and c1b == c1
    pad = kh1 // 2
    hpad = img_size + 2 * pad
    wpad = hpad
    h1 = hpad - kh1 + 1
    w1d = wpad - kw1 + 1
    h2 = h1 - kh2 + 1
    w2d = w1d - kw2 + 1
    pool_k = 8
    # TODO(synk): general tiled MaxPool2d (pooled map > 1x1) not implemented; at the module's
    # shapes the 8x8 pooling window covers the whole conv2 output, which is asserted here.
    assert h2 == pool_k and w2d == pool_k, "pool window must cover the full conv2 output"
    n_out, n_in = wl.shape
    assert n_in == c2 * (h2 // pool_k) * (w2d // pool_k)

    bsz = x.shape[0]
    bb = batch_block if batch_block is not None else max(1, min(bsz, 32))
    nblk = -(-bsz // bb)
    bsz_pad = nblk * bb

    x3 = x.reshape(bsz, img_size, img_size).astype(f32)    # Cin == 1
    if bsz_pad != bsz:
        x3 = jnp.concatenate(
            [x3, jnp.zeros((bsz_pad - bsz, img_size, img_size), f32)], axis=0)

    hp1 = _round_up(hpad, 8)                 # sublane-aligned plane height for Xstack
    nl = _round_up(bb * wpad, 128)           # matmul lane width per grid step
    bbpad = _round_up(bb, 128)               # lane-dense output tile width

    # ---- banded conv weights: fold the H-axis of each conv into the matmul row/col dims -----
    # conv1: W1BAND[(c*h1+i), (kw*hp1+h)] = w1[h-i, kw, 0, c]  if 0 <= h-i < kh1 else 0
    ii = jnp.arange(h1)[:, None]
    hh = jnp.arange(hp1)[None, :]
    d1 = hh - ii
    m1 = (d1 >= 0) & (d1 < kh1)
    w1g = w1[jnp.clip(d1, 0, kh1 - 1), :, 0, :]                       # (h1, hp1, kw1, c1)
    w1g = jnp.where(m1[..., None, None], w1g, 0.0)
    w1band = jnp.transpose(w1g, (3, 0, 2, 1)).reshape(c1 * h1, kw1 * hp1).astype(f32)
    b1v = jnp.repeat(b1, h1).reshape(c1 * h1, 1).astype(f32)

    # conv2: W2BAND[(c2*h2+i2), (kw*c1*h1 + c*h1 + i')] = w2[i'-i2, kw, c, c2]  if 0 <= i'-i2 < kh2
    i2 = jnp.arange(h2)[:, None]
    ip = jnp.arange(h1)[None, :]
    d2 = ip - i2
    m2 = (d2 >= 0) & (d2 < kh2)
    w2g = w2[jnp.clip(d2, 0, kh2 - 1)]                                # (h2, h1, kw2, c1, c2)
    w2g = jnp.where(m2[..., None, None, None], w2g, 0.0)
    w2band = jnp.transpose(w2g, (4, 0, 2, 3, 1)).reshape(c2 * h2, kw2 * c1 * h1).astype(f32)
    b2v = jnp.repeat(b2, h2).reshape(c2 * h2, 1).astype(f32)

    # valid-column mask for the pooling (j < w2d inside each image's Wpad-wide lane block)
    lane = jnp.arange(nl)
    maskv = (((lane % wpad) < w2d) & (lane < bb * wpad)).astype(f32).reshape(1, nl)

    kernel = functools.partial(
        _cnn1_fused_kernel, bb=bb, img=img_size, pad=pad, kw1=kw1, c1=c1, h1=h1,
        kw2=kw2, c2=c2, h2=h2, wpad=wpad, nl=nl)

    out = pl.pallas_call(
        kernel,
        out_shape=jax.ShapeDtypeStruct((nblk, n_out, bbpad), f32),
        grid=(nblk,),
        in_specs=[
            pl.BlockSpec((bb, img_size, img_size), lambda i: (i, 0, 0)),     # x batch block
            pl.BlockSpec((c1 * h1, kw1 * hp1), lambda i: (0, 0)),            # W1BAND
            pl.BlockSpec((c1 * h1, 1), lambda i: (0, 0)),                    # b1 per-row
            pl.BlockSpec((c2 * h2, kw2 * c1 * h1), lambda i: (0, 0)),        # W2BAND
            pl.BlockSpec((c2 * h2, 1), lambda i: (0, 0)),                    # b2 per-row
            pl.BlockSpec((n_out, c2), lambda i: (0, 0)),                     # linear weight
            pl.BlockSpec((n_out, 1), lambda i: (0, 0)),                      # linear bias
            pl.BlockSpec((1, nl), lambda i: (0, 0)),                         # pooling mask
        ],
        out_specs=pl.BlockSpec((1, n_out, bbpad), lambda i: (i, 0, 0)),
        scratch_shapes=[
            pltpu.VMEM((hp1, nl + 128), f32),            # padded input (batch on lanes)
            pltpu.VMEM((c1 * h1, nl + 128), f32),        # conv1 output + lane slack for shifts
        ],
        compiler_params=pltpu.CompilerParams(
            dimension_semantics=("parallel",)),          # megacore split across batch blocks
    )(x3, w1band, b1v, w2band, b2v, wl.astype(f32),
      bl.reshape(n_out, 1).astype(f32), maskv)

    out = jnp.transpose(out, (0, 2, 1))[:, :bb, :].reshape(bsz_pad, n_out)[:bsz]
    return out


# --------------------------------------------------------------------------
# Pure-JAX reference (for correctness checking)
# --------------------------------------------------------------------------

def cnn1_reference(x, params, img_size):
    bsz = x.shape[0]
    xn = jnp.transpose(x.reshape(bsz, 1, img_size, img_size), (0, 2, 3, 1))
    pad1 = params["w1"].shape[0] // 2
    dn = ("NHWC", "HWIO", "NHWC")
    y1 = lax.conv_general_dilated(xn, params["w1"], (1, 1),
                                  [(pad1, pad1), (pad1, pad1)],
                                  dimension_numbers=dn) + params["b1"]
    y1 = jnp.maximum(y1, 0.0)
    y2 = lax.conv_general_dilated(y1, params["w2"], (1, 1), "VALID",
                                  dimension_numbers=dn) + params["b2"]
    pooled = jnp.max(y2, axis=(1, 2))                  # 8x8 pool == full spatial map here
    return pooled @ params["wl"].T + params["bl"]


# --------------------------------------------------------------------------
# Main
# --------------------------------------------------------------------------

if __name__ == "__main__":
    # Shape-consistent small config: conv1(k=6,pad=3): 16 -> 17; conv2(k=10): 17 -> 8;
    # maxpool(8): 8 -> 1; flatten: 4*1*1 = 4; linear: 4 -> 4.
    img_size, n1_chan, n1_kern, n2_kern = 16, 8, 6, 10
    h1 = img_size + 2 * (n1_kern // 2) - n1_kern + 1
    h2 = h1 - n2_kern + 1
    in_features = 4 * (h2 // 8) * (h2 // 8)

    key = jax.random.PRNGKey(0)
    kx, k1, k2, k3, k4, k5, k6 = jax.random.split(key, 7)

    params = {
        "w1": 0.10 * jax.random.normal(k1, (n1_kern, n1_kern, 1, n1_chan), jnp.float32),
        "b1": 0.10 * jax.random.normal(k2, (n1_chan,), jnp.float32),
        "w2": 0.05 * jax.random.normal(k3, (n2_kern, n2_kern, n1_chan, 4), jnp.float32),
        "b2": 0.10 * jax.random.normal(k4, (4,), jnp.float32),
        "wl": 0.10 * jax.random.normal(k5, (4, in_features), jnp.float32),
        "bl": 0.10 * jax.random.normal(k6, (4,), jnp.float32),
    }

    x = jax.random.normal(kx, (2, img_size * img_size), jnp.float32)

    out = jax.block_until_ready(cnn1_forward(x, params, img_size))
    ref = cnn1_reference(x, params, img_size)

    assert out.shape == (2, 4), out.shape
    assert jnp.allclose(out, ref, rtol=2e-3, atol=2e-3), (out, ref)

    print("KERNEL_OK")
</pallas_src>

<mosaic_0001>
module attributes {stable_mosaic.version = 11 : i64} {
  func.func @_cnn1_fused_kernel(%arg0: i32, %arg1: memref<2x16x16xf32, #tpu.memory_space<vmem>>, %arg2: memref<136x144xf32, #tpu.memory_space<vmem>>, %arg3: memref<136x1xf32, #tpu.memory_space<vmem>>, %arg4: memref<32x1360xf32, #tpu.memory_space<vmem>>, %arg5: memref<32x1xf32, #tpu.memory_space<vmem>>, %arg6: memref<4x4xf32, #tpu.memory_space<vmem>>, %arg7: memref<4x1xf32, #tpu.memory_space<vmem>>, %arg8: memref<1x128xf32, #tpu.memory_space<vmem>>, %arg9: memref<1x4x128xf32, #tpu.memory_space<vmem>>, %arg10: memref<24x256xf32, #tpu.memory_space<vmem>>, %arg11: memref<136x256xf32, #tpu.memory_space<vmem>>) attributes {dimension_semantics = [#tpu.dimension_semantics<parallel>], iteration_bounds = array<i64: 1>, scalar_prefetch = 0 : i64, scratch_operands = 2 : i64, tpu.core_type = #tpu.core_type<tc>, window_params = [{transform_indices = @transform_0, window_bounds = array<i64: 2, 16, 16>}, {pipeline_mode = #tpu.pipeline_mode<synchronous>, transform_indices = @transform_1, window_bounds = array<i64: 136, 144>}, {pipeline_mode = #tpu.pipeline_mode<synchronous>, transform_indices = @transform_2, window_bounds = array<i64: 136, 1>}, {pipeline_mode = #tpu.pipeline_mode<synchronous>, transform_indices = @transform_3, window_bounds = array<i64: 32, 1360>}, {pipeline_mode = #tpu.pipeline_mode<synchronous>, transform_indices = @transform_4, window_bounds = array<i64: 32, 1>}, {pipeline_mode = #tpu.pipeline_mode<synchronous>, transform_indices = @transform_5, window_bounds = array<i64: 4, 4>}, {pipeline_mode = #tpu.pipeline_mode<synchronous>, transform_indices = @transform_6, window_bounds = array<i64: 4, 1>}, {pipeline_mode = #tpu.pipeline_mode<synchronous>, transform_indices = @transform_7, window_bounds = array<i64: 1, 128>}, {transform_indices = @transform_8, window_bounds = array<i64: 1, 4, 128>}]} {
    %cst = arith.constant 0.000000e+00 : f32
    %0 = vector.broadcast %cst : f32 to vector<24x256xf32>
    %c0 = arith.constant 0 : index
    %c0_0 = arith.constant 0 : index
    %1 = vector.load %arg10[%c0, %c0_0] : memref<24x256xf32, #tpu.memory_space<vmem>>, vector<24x256xf32>
    tpu.vector_store %arg10[%c0, %c0_0], %0 {strides = array<i32>} : memref<24x256xf32, #tpu.memory_space<vmem>>, vector<24x256xf32>,
    %c0_1 = arith.constant 0 : index
    %c0_2 = arith.constant 0 : index
    %c0_3 = arith.constant 0 : index
    %2 = vector.load %arg1[%c0_1, %c0_2, %c0_3] : memref<2x16x16xf32, #tpu.memory_space<vmem>>, vector<1x16x16xf32>
    %3 = vector.shape_cast %2 : vector<1x16x16xf32> to vector<16x16xf32>
    %c3 = arith.constant 3 : index
    %c3_4 = arith.constant 3 : index
    %4 = vector.load %arg10[%c3, %c3_4] : memref<24x256xf32, #tpu.memory_space<vmem>>, vector<16x16xf32>
    tpu.vector_store %arg10[%c3, %c3_4], %3 {strides = array<i32>} : memref<24x256xf32, #tpu.memory_space<vmem>>, vector<16x16xf32>,
    %c1 = arith.constant 1 : index
    %c0_5 = arith.constant 0 : index
    %c0_6 = arith.constant 0 : index
    %5 = vector.load %arg1[%c1, %c0_5, %c0_6] : memref<2x16x16xf32, #tpu.memory_space<vmem>>, vector<1x16x16xf32>
    %6 = vector.shape_cast %5 : vector<1x16x16xf32> to vector<16x16xf32>
    %c3_7 = arith.constant 3 : index
    %c25 = arith.constant 25 : index
    %7 = vector.load %arg10[%c3_7, %c25] : memref<24x256xf32, #tpu.memory_space<vmem>>, vector<16x16xf32>
    tpu.vector_store %arg10[%c3_7, %c25], %6 {strides = array<i32>} : memref<24x256xf32, #tpu.memory_space<vmem>>, vector<16x16xf32>,
    %c0_8 = arith.constant 0 : index
    %c0_9 = arith.constant 0 : index
    %8 = vector.load %arg10[%c0_8, %c0_9] : memref<24x256xf32, #tpu.memory_space<vmem>>, vector<24x128xf32>
    %c0_10 = arith.constant 0 : index
    %c1_11 = arith.constant 1 : index
    %9 = vector.load %arg10[%c0_10, %c1_11] : memref<24x256xf32, #tpu.memory_space<vmem>>, vector<24x128xf32>
    %c0_12 = arith.constant 0 : index
    %c2 = arith.constant 2 : index
    %10 = vector.load %arg10[%c0_12, %c2] : memref<24x256xf32, #tpu.memory_space<vmem>>, vector<24x128xf32>
    %c0_13 = arith.constant 0 : index
    %c3_14 = arith.constant 3 : index
    %11 = vector.load %arg10[%c0_13, %c3_14] : memref<24x256xf32, #tpu.memory_space<vmem>>, vector<24x128xf32>
    %c0_15 = arith.constant 0 : index
    %c4 = arith.constant 4 : index
    %12 = vector.load %arg10[%c0_15, %c4] : memref<24x256xf32, #tpu.memory_space<vmem>>, vector<24x128xf32>
    %c0_16 = arith.constant 0 : index
    %c5 = arith.constant 5 : index
    %13 = vector.load %arg10[%c0_16, %c5] : memref<24x256xf32, #tpu.memory_space<vmem>>, vector<24x128xf32>
    %14 = tpu.concatenate %8, %9, %10, %11, %12, %13 in 0 : vector<24x128xf32>, vector<24x128xf32>, vector<24x128xf32>, vector<24x128xf32>, vector<24x128xf32>, vector<24x128xf32> -> vector<144x128xf32>
    %c0_17 = arith.constant 0 : index
    %c0_18 = arith.constant 0 : index
    %15 = vector.load %arg2[%c0_17, %c0_18] : memref<136x144xf32, #tpu.memory_space<vmem>>, vector<136x144xf32>
    %cst_19 = arith.constant dense<0.000000e+00> : vector<136x128xf32>
    %16 = tpu.matmul %15, %14, %cst_19 {dimension_numbers = #tpu.dot_dimension_numbers<[1], [0], [0], [1], [0, 0, 1, 1], [], []>} : vector<136x144xf32>, vector<144x128xf32>, vector<136x128xf32> -> vector<136x128xf32>
    %c0_20 = arith.constant 0 : index
    %c0_21 = arith.constant 0 : index
    %17 = vector.load %arg3[%c0_20, %c0_21] : memref<136x1xf32, #tpu.memory_space<vmem>>, vector<136x1xf32>
    %18 = vector.broadcast %17 : vector<136x1xf32> to vector<136x128xf32>
    %19 = arith.addf %16, %18 : vector<136x128xf32>
    %cst_22 = arith.constant 0.000000e+00 : f32
    %20 = vector.broadcast %cst_22 : f32 to vector<136x128xf32>
    %21 = arith.maximumf %19, %20 : vector<136x128xf32>
    %c0_23 = arith.constant 0 : index
    %c0_24 = arith.constant 0 : index
    %22 = vector.load %arg11[%c0_23, %c0_24] : memref<136x256xf32, #tpu.memory_space<vmem>>, vector<136x128xf32>
    tpu.vector_store %arg11[%c0_23, %c0_24], %21 {strides = array<i32>} : memref<136x256xf32, #tpu.memory_space<vmem>>, vector<136x128xf32>,
    %cst_25 = arith.constant 0.000000e+00 : f32
    %23 = vector.broadcast %cst_25 : f32 to vector<136x128xf32>
    %c0_26 = arith.constant 0 : index
    %c128 = arith.constant 128 : index
    %24 = vector.load %arg11[%c0_26, %c128] : memref<136x256xf32, #tpu.memory_space<vmem>>, vector<136x128xf32>
    tpu.vector_store %arg11[%c0_26, %c128], %23 {strides = array<i32>} : memref<136x256xf32, #tpu.memory_space<vmem>>, vector<136x128xf32>,
    %c0_27 = arith.constant 0 : index
    %c0_28 = arith.constant 0 : index
    %25 = vector.load %arg11[%c0_27, %c0_28] : memref<136x256xf32, #tpu.memory_space<vmem>>, vector<136x128xf32>
    %c0_29 = arith.constant 0 : index
    %c1_30 = arith.constant 1 : index
    %26 = vector.load %arg11[%c0_29, %c1_30] : memref<136x256xf32, #tpu.memory_space<vmem>>, vector<136x128xf32>
    %c0_31 = arith.constant 0 : index
    %c2_32 = arith.constant 2 : index
    %27 = vector.load %arg11[%c0_31, %c2_32] : memref<136x256xf32, #tpu.memory_space<vmem>>, vector<136x128xf32>
    %c0_33 = arith.constant 0 : index
    %c3_34 = arith.constant 3 : index
    %28 = vector.load %arg11[%c0_33, %c3_34] : memref<136x256xf32, #tpu.memory_space<vmem>>, vector<136x128xf32>
    %c0_35 = arith.constant 0 : index
    %c4_36 = arith.constant 4 : index
    %29 = vector.load %arg11[%c0_35, %c4_36] : memref<136x256xf32, #tpu.memory_space<vmem>>, vector<136x128xf32>
    %c0_37 = arith.constant 0 : index
    %c5_38 = arith.constant 5 : index
    %30 = vector.load %arg11[%c0_37, %c5_38] : memref<136x256xf32, #tpu.memory_space<vmem>>, vector<136x128xf32>
    %c0_39 = arith.constant 0 : index
    %c6 = arith.constant 6 : index
    %31 = vector.load %arg11[%c0_39, %c6] : memref<136x256xf32, #tpu.memory_space<vmem>>, vector<136x128xf32>
    %c0_40 = arith.constant 0 : index
    %c7 = arith.constant 7 : index
    %32 = vector.load %arg11[%c0_40, %c7] : memref<136x256xf32, #tpu.memory_space<vmem>>, vector<136x128xf32>
    %c0_41 = arith.constant 0 : index
    %c8 = arith.constant 8 : index
    %33 = vector.load %arg11[%c0_41, %c8] : memref<136x256xf32, #tpu.memory_space<vmem>>, vector<136x128xf32>
    %c0_42 = arith.constant 0 : index
    %c9 = arith.constant 9 : index
    %34 = vector.load %arg11[%c0_42, %c9] : memref<136x256xf32, #tpu.memory_space<vmem>>, vector<136x128xf32>
    %35 = tpu.concatenate %25, %26, %27, %28, %29, %30, %31, %32, %33, %34 in 0 : vector<136x128xf32>, vector<136x128xf32>, vector<136x128xf32>, vector<136x128xf32>, vector<136x128xf32>, vector<136x128xf32>, vector<136x128xf32>, vector<136x128xf32>, vector<136x128xf32>, vector<136x128xf32> -> vector<1360x128xf32>
    %c0_43 = arith.constant 0 : index
    %c0_44 = arith.constant 0 : index
    %36 = vector.load %arg4[%c0_43, %c0_44] : memref<32x1360xf32, #tpu.memory_space<vmem>>, vector<32x1360xf32>
    %cst_45 = arith.constant dense<0.000000e+00> : vector<32x128xf32>
    %37 = tpu.matmul %36, %35, %cst_45 {dimension_numbers = #tpu.dot_dimension_numbers<[1], [0], [0], [1], [0, 0, 1, 1], [], []>} : vector<32x1360xf32>, vector<1360x128xf32>, vector<32x128xf32> -> vector<32x128xf32>
    %c0_46 = arith.constant 0 : index
    %c0_47 = arith.constant 0 : index
    %38 = vector.load %arg5[%c0_46, %c0_47] : memref<32x1xf32, #tpu.memory_space<vmem>>, vector<32x1xf32>
    %39 = vector.broadcast %38 : vector<32x1xf32> to vector<32x128xf32>
    %40 = arith.addf %37, %39 : vector<32x128xf32>
    %c0_48 = arith.constant 0 : index
    %c0_49 = arith.constant 0 : index
    %41 = vector.load %arg8[%c0_48, %c0_49] : memref<1x128xf32, #tpu.memory_space<vmem>>, vector<1x128xf32>
    %cst_50 = arith.constant 5.000000e-01 : f32
    %42 = vector.broadcast %cst_50 : f32 to vector<1x128xf32>
    %43 = arith.cmpf ogt, %41, %42 : vector<1x128xf32>
    %cst_51 = arith.constant 0xFF800000 : f32
    %44 = vector.shape_cast %43 : vector<1x128xi1> to vector<1x128xi1>
    %45 = vector.broadcast %44 : vector<1x128xi1> to vector<32x128xi1>
    %46 = vector.broadcast %cst_51 : f32 to vector<32x128xf32>
    %47 = arith.select %45, %40, %46 : vector<32x128xi1>, vector<32x128xf32>
    %48 = vector.extract_strided_slice %47 {offsets = [0, 0], sizes = [32, 44], strides = [1, 1]} : vector<32x128xf32> to vector<32x44xf32>
    %49 = vector.shape_cast %48 : vector<32x44xf32> to vector<4x8x44xf32>
    %cst_52 = arith.constant dense<0xFF800000> : vector<4x44xf32>
    %50 = vector.multi_reduction <maximumf>, %49, %cst_52 [1] : vector<4x8x44xf32> to vector<4x44xf32>
    %51 = vector.shape_cast %50 : vector<4x44xf32> to vector<4x2x22xf32>
    %cst_53 = arith.constant dense<0xFF800000> : vector<4x2xf32>
    %52 = vector.multi_reduction <maximumf>, %51, %cst_53 [2] : vector<4x2x22xf32> to vector<4x2xf32>
    %c0_54 = arith.constant 0 : index
    %c0_55 = arith.constant 0 : index
    %53 = vector.load %arg7[%c0_54, %c0_55] : memref<4x1xf32, #tpu.memory_space<vmem>>, vector<4x1xf32>
    %c0_56 = arith.constant 0 : index
    %c0_57 = arith.constant 0 : index
    %54 = vector.load %arg6[%c0_56, %c0_57] : memref<4x4xf32, #tpu.memory_space<vmem>>, vector<4x1xf32>
    %55 = vector.extract_strided_slice %52 {offsets = [0, 0], sizes = [1, 2], strides = [1, 1]} : vector<4x2xf32> to vector<1x2xf32>
    %56 = vector.broadcast %54 : vector<4x1xf32> to vector<4x2xf32>
    %57 = vector.broadcast %55 : vector<1x2xf32> to vector<4x2xf32>
    %58 = arith.mulf %56, %57 : vector<4x2xf32>
    %59 = vector.broadcast %53 : vector<4x1xf32> to vector<4x2xf32>
    %60 = arith.addf %59, %58 : vector<4x2xf32>
    %c0_58 = arith.constant 0 : index
    %c1_59 = arith.constant 1 : index
    %61 = vector.load %arg6[%c0_58, %c1_59] : memref<4x4xf32, #tpu.memory_space<vmem>>, vector<4x1xf32>
    %62 = vector.extract_strided_slice %52 {offsets = [1, 0], sizes = [1, 2], strides = [1, 1]} : vector<4x2xf32> to vector<1x2xf32>
    %63 = vector.broadcast %61 : vector<4x1xf32> to vector<4x2xf32>
    %64 = vector.broadcast %62 : vector<1x2xf32> to vector<4x2xf32>
    %65 = arith.mulf %63, %64 : vector<4x2xf32>
    %66 = arith.addf %60, %65 : vector<4x2xf32>
    %c0_60 = arith.constant 0 : index
    %c2_61 = arith.constant 2 : index
    %67 = vector.load %arg6[%c0_60, %c2_61] : memref<4x4xf32, #tpu.memory_space<vmem>>, vector<4x1xf32>
    %68 = vector.extract_strided_slice %52 {offsets = [2, 0], sizes = [1, 2], strides = [1, 1]} : vector<4x2xf32> to vector<1x2xf32>
    %69 = vector.broadcast %67 : vector<4x1xf32> to vector<4x2xf32>
    %70 = vector.broadcast %68 : vector<1x2xf32> to vector<4x2xf32>
    %71 = arith.mulf %69, %70 : vector<4x2xf32>
    %72 = arith.addf %66, %71 : vector<4x2xf32>
    %c0_62 = arith.constant 0 : index
    %c3_63 = arith.constant 3 : index
    %73 = vector.load %arg6[%c0_62, %c3_63] : memref<4x4xf32, #tpu.memory_space<vmem>>, vector<4x1xf32>
    %74 = vector.extract_strided_slice %52 {offsets = [3, 0], sizes = [1, 2], strides = [1, 1]} : vector<4x2xf32> to vector<1x2xf32>
    %75 = vector.broadcast %73 : vector<4x1xf32> to vector<4x2xf32>
    %76 = vector.broadcast %74 : vector<1x2xf32> to vector<4x2xf32>
    %77 = arith.mulf %75, %76 : vector<4x2xf32>
    %78 = arith.addf %72, %77 : vector<4x2xf32>
    %cst_64 = arith.constant 0.000000e+00 : f32
    %79 = vector.broadcast %cst_64 : f32 to vector<4x128xf32>
    %c0_65 = arith.constant 0 : index
    %c0_66 = arith.constant 0 : index
    %c0_67 = arith.constant 0 : index
    %80 = vector.load %arg9[%c0_65, %c0_66, %c0_67] : memref<1x4x128xf32, #tpu.memory_space<vmem>>, vector<1x4x128xf32>
    %81 = vector.shape_cast %80 : vector<1x4x128xf32> to vector<4x128xf32>
    %82 = vector.shape_cast %79 : vector<4x128xf32> to vector<1x4x128xf32>
    tpu.vector_store %arg9[%c0_65, %c0_66, %c0_67], %82 {strides = array<i32>} : memref<1x4x128xf32, #tpu.memory_space<vmem>>, vector<1x4x128xf32>,
    %c0_68 = arith.constant 0 : index
    %c0_69 = arith.constant 0 : index
    %c0_70 = arith.constant 0 : index
    %83 = vector.load %arg9[%c0_68, %c0_69, %c0_70] : memref<1x4x128xf32, #tpu.memory_space<vmem>>, vector<1x4x2xf32>
    %84 = vector.shape_cast %83 : vector<1x4x2xf32> to vector<4x2xf32>
    %85 = vector.shape_cast %78 : vector<4x2xf32> to vector<1x4x2xf32>
    tpu.vector_store %arg9[%c0_68, %c0_69, %c0_70], %85 {strides = array<i32>} : memref<1x4x128xf32, #tpu.memory_space<vmem>>, vector<1x4x2xf32>,
    return
  }
  func.func @transform_0(%arg0: i32) -> (i32, i32, i32) {
    %c0_i32 = arith.constant 0 : i32
    %c0_i32_0 = arith.constant 0 : i32
    %c0_i32_1 = arith.constant 0 : i32
    return %arg0, %c0_i32, %c0_i32_0 : i32, i32, i32
  }
  func.func @transform_1(%arg0: i32) -> (i32, i32) {
    %c0_i32 = arith.constant 0 : i32
    %c0_i32_0 = arith.constant 0 : i32
    %c0_i32_1 = arith.constant 0 : i32
    return %c0_i32, %c0_i32_0 : i32, i32
  }
  func.func @transform_2(%arg0: i32) -> (i32, i32) {
    %c0_i32 = arith.constant 0 : i32
    %c0_i32_0 = arith.constant 0 : i32
    %c0_i32_1 = arith.constant 0 : i32
    return %c0_i32, %c0_i32_0 : i32, i32
  }
  func.func @transform_3(%arg0: i32) -> (i32, i32) {
    %c0_i32 = arith.constant 0 : i32
    %c0_i32_0 = arith.constant 0 : i32
    %c0_i32_1 = arith.constant 0 : i32
    return %c0_i32, %c0_i32_0 : i32, i32
  }
  func.func @transform_4(%arg0: i32) -> (i32, i32) {
    %c0_i32 = arith.constant 0 : i32
    %c0_i32_0 = arith.constant 0 : i32
    %c0_i32_1 = arith.constant 0 : i32
    return %c0_i32, %c0_i32_0 : i32, i32
  }
  func.func @transform_5(%arg0: i32) -> (i32, i32) {
    %c0_i32 = arith.constant 0 : i32
    %c0_i32_0 = arith.constant 0 : i32
    %c0_i32_1 = arith.constant 0 : i32
    return %c0_i32, %c0_i32_0 : i32, i32
  }
  func.func @transform_6(%arg0: i32) -> (i32, i32) {
    %c0_i32 = arith.constant 0 : i32
    %c0_i32_0 = arith.constant 0 : i32
    %c0_i32_1 = arith.constant 0 : i32
    return %c0_i32, %c0_i32_0 : i32, i32
  }
  func.func @transform_7(%arg0: i32) -> (i32, i32) {
    %c0_i32 = arith.constant 0 : i32
    %c0_i32_0 = arith.constant 0 : i32
    %c0_i32_1 = arith.constant 0 : i32
    return %c0_i32, %c0_i32_0 : i32, i32
  }
  func.func @transform_8(%arg0: i32) -> (i32, i32, i32) {
    %c0_i32 = arith.constant 0 : i32
    %c0_i32_0 = arith.constant 0 : i32
    %c0_i32_1 = arith.constant 0 : i32
    return %arg0, %c0_i32, %c0_i32_0 : i32, i32, i32
  }
}

</mosaic_0001>

<bundles_post_ra>
// kernel: tpu_custom_call.1
= control target key start
LH: loop header
LB: loop body
LE: loop exit
PB: predicated region body
PF: predicated region fallthrough
CT: control target
= control target key end

     0   :  { %13 = vsyncpa [#allocation5], 0  ;;  %s5394_s0 = inlined_call_operand.vmem [shape: f32[2,16,16], index: 0, kind: input, shape index: {}]   ;;  %s5395_s1 = inlined_call_operand.hbm [shape: f32[136,144], index: 1, kind: input, shape index: {}]   ;;  %s5396_s2 = inlined_call_operand.vmem [shape: f32[136,1], index: 2, kind: input, shape index: {}]   ;;  %s5397_s3 = inlined_call_operand.hbm [shape: f32[32,1360], index: 3, kind: input, shape index: {}]   ;;  %s5398_s4 = inlined_call_operand.vmem [shape: f32[32,1], index: 4, kind: input, shape index: {}]   ;;  %s5399_s5 = inlined_call_operand.vmem [shape: f32[4,4], index: 5, kind: input, shape index: {}]   ;;  %s5400_s6 = inlined_call_operand.vmem [shape: f32[4,1], index: 6, kind: input, shape index: {}]   ;;  %s5401_s7 = inlined_call_operand.vmem [shape: f32[1,128], index: 7, kind: input, shape index: {}]   ;;  %s5402_s8 = inlined_call_operand.hbm [shape: f32[1,4,128], index: 8, kind: output, shape index: {}]  }
   0x1   :  { %14 = vsyncpa [#allocation8], 0 }
   0x2   :  { %15 = vsyncpa [#allocation6], 0  ;;  %s3843_s27 = smov [#allocation4]   ;;  %s3771_s9 = scalar_lea.hbm %s5395_s1, 4352 }
   0x3   :  { %s23_s28 = sshll.u32 %s3843_s27, 4  ;;  %p3772_p0 = scmp.ne.s32.totalorder %s5395_s1, %s3771_s9  ;;  %s24_s28 = int_to_ptr.vmem [resolvable:$true] %s23_s28 }
   0x4   :  { %p3775_p1 = scmp.lt.u32.totalorder %s3771_s9, %s5395_s1 }
   0x6   :  { %p3777_p2 = pnand %p3775_p1, %p3772_p0 }
   0x8   :  { %3780 = shalt.err (!%p3777_p2)
}
   0x9   :  { %s3781_s14 = scalar_lea.vmem %s24_s28, 4352  ;;  %p3786_p4 = scmp.lt.s32.totalorder %s24_s28, %s24_s28 }
   0xa   :  { %p3782_p3 = scmp.ne.s32.totalorder %s24_s28, %s3781_s14  ;;  %p3787_p5 = scmp.lt.s32.totalorder %s3781_s14, %s3781_s14 }
   0xc   :  { %p3788_p6 = por %p3787_p5, %p3786_p4 }
   0xe   :  { %p3789_p7 = pnand %p3788_p6, %p3782_p3 }
  0x10   :  { %3792 = shalt.err (!%p3789_p7)
}
  0x11   :  { %s3844_s15 = smov 256   ;;  %s3845_s16 = smov 16  }
  0x12   :  { %29 = dma.hbm_to_vmem [thread:$0]  %s5395_s1, 4352, %s24_s28, [#allocation5], %s3844_s15, %s3844_s15, %s3845_s16  }
  0x13   :  { %s3846_s19 = smov [#allocation7]   ;;  %s3793_s23 = scalar_lea.hbm %s5397_s3, 5632 }
  0x14   :  { %s37_s20 = sshll.u32 %s3846_s19, 4  ;;  %p3794_p8 = scmp.ne.s32.totalorder %s5397_s3, %s3793_s23  ;;  %s38_s20 = int_to_ptr.vmem [resolvable:$true] %s37_s20 }
  0x15   :  { %p3797_p9 = scmp.lt.u32.totalorder %s3793_s23, %s5397_s3 }
  0x17   :  { %p3799_p10 = pnand %p3797_p9, %p3794_p8 }
  0x19   :  { %3802 = shalt.err (!%p3799_p10)
}
  0x1a   :  { %s3803_s29 = scalar_lea.vmem %s38_s20, 5632  ;;  %p3808_p12 = scmp.lt.s32.totalorder %s38_s20, %s38_s20 }
  0x1b   :  { %p3804_p11 = scmp.ne.s32.totalorder %s38_s20, %s3803_s29  ;;  %p3809_p13 = scmp.lt.s32.totalorder %s3803_s29, %s3803_s29 }
  0x1d   :  { %p3810_p0 = por %p3809_p13, %p3808_p12 }
  0x1f   :  { %p3811_p1 = pnand %p3810_p0, %p3804_p11 }
  0x21   :  { %3814 = shalt.err (!%p3811_p1)
}
  0x22   :  { %s3847_s1 = smov 1408   ;;  %s3848_s28 = smov 88  }
  0x23   :  { %43 = dma.hbm_to_vmem [thread:$0]  %s5397_s3, 5632, %s38_s20, [#allocation8], %s3847_s1, %s3847_s1, %s3848_s28  }
  0x24   :  { %3837 = dma.done.wait [#allocation5], 4352  }
  0x25   :  { %3838 = vsyncadd [#allocation5], 4294962944 }
  0x26   :  { %3839 = dma.done.wait [#allocation8], 5632  }
  0x27   :  { %3840 = vsyncadd [#allocation8], 4294961664  ;;  %v3849_v0 = vmov 0.0   ;;  %v65_v1 = vld [vmem:[%s5394_s0 + $0x8] sm:$0xff]  ;;  %v64_v2 = vld [vmem:[%s5394_s0] sm:$0xff]  ;;  %vm68_vm0 = vcmask 1042432  }
  0x28   :  { %62 = vst [vmem:[#allocation2 + $0x20] sm:$0xff] %v3849_v0  ;;  %58 = vst [vmem:[#allocation2] sm:$0xff] %v3849_v0  ;;  %v2407_v3 = vld [vmem:[%s5394_s0 + $0x10] sm:$0xff]  ;;  %v70_v4 = vrot.slane %v65_v1, 5  ;;  %v69_v5 = vrot.slane %v64_v2, 5  ;;  %v2408_v6 = vld [vmem:[%s5394_s0 + $0x18] sm:$0xff] }
  0x29   :  { %59 = vst [vmem:[#allocation2 + $0x8] sm:$0xff] %v3849_v0  ;;  %60 = vst [vmem:[#allocation2 + $0x10] sm:$0xff] %v3849_v0  ;;  %s3850_s17 = smov 3   ;;  %v92_v7 = vrot.slane %v2407_v3, 5  ;;  %v93_v9 = vrot.slane %v2408_v6, 5  ;;  %v3851_v10 = vmov 0.0|0.0  }
  0x2a   :  { %2388 = vst [vmem:[#allocation9] sm:$0xf] %v3849_v0  ;;  %76 = vrot.lane.b32.xlu1 %v70_v4, %s3850_s17  ;;  %72 = vrot.lane.b32.xlu0 %v69_v5, %s3850_s17  ;;  %v71_v8 = vsel %vm68_vm0, %v69_v5, %v70_v4  ;;  %s3852_s18 = smov 25   ;;  %vm85_vm1 = vcmask 149528   ;;  %vm81_vm2 = vcmask 154651   ;;  %vm104_vm3 = vcmask 335051  }
  0x2b   :  { %2690 = vmatprep.subr.bf16.mxu0 %v3851_v10  ;;  %v94_v11 = vsel %vm68_vm0, %v92_v7, %v93_v9  ;;  %vm83_vm4 = vcmask 154648   ;;  %vm106_vm5 = vcmask 335048   ;;  %vm108_vm6 = vcmask 329928   ;;  %s3853_s0 = smov 127   ;;  %s3854_s19 = smov 126   ;;  %v221_v25 = vld [vmem:[#allocation4 + $0x8] sm:$0xff] }
  0x2c   :  { %s3855_s20 = smov 125   ;;  %s3856_s21 = smov 124   ;;  %vm356_vm7 = vcmask 130048   ;;  %v5403_v26 = vmov 0   ;;  %v254_v27 = vld [vmem:[%s5396_s2] sm:$0xff]  ;;  %v256_v28 = vld [vmem:[%s5396_s2 + $0x10] sm:$0xff] }
  0x2d   :  { %2409 = vmatprep.mubr.msk.f32.mxu0 %vm356_vm7, %v221_v25  ;;  %s3857_s22 = smov 123   ;;  %2999 = vset.pattern.permute.xlu1 %v5403_v26  ;;  %v257_v29 = vld [vmem:[%s5396_s2 + $0x18] sm:$0xff]  ;;  %v259_v30 = vld [vmem:[%s5396_s2 + $0x28] sm:$0xff]  ;;  %v258_v33 = vld [vmem:[%s5396_s2 + $0x20] sm:$0xff]  ;;  %vm137_vm8 = vcmask 1039360   ;;  %vm156_vm9 = vcmask 1031168  }
  0x2e   :  { %95 = vrot.lane.b32.xlu0 %v92_v7, %s3852_s18  ;;  %74 = vrot.lane.b32.xlu1 %v71_v8, %s3850_s17  ;;  %v261_v31 = vld [vmem:[%s5396_s2 + $0x38] sm:$0xff]  ;;  %v255_v32 = vld [vmem:[%s5396_s2 + $0x8] sm:$0xff]  ;;  %vm175_vm10 = vcmask 1022976   ;;  %vm194_vm11 = vcmask 1014784   ;;  %vm213_vm12 = vcmask 1006592   ;;  %s3860_s13 = smov 121  }
  0x2f   :  { %3000 = vset.pattern.permute.xlu0 %v5403_v26  ;;  %v263_v34 = vld [vmem:[%s5396_s2 + $0x48] sm:$0xff]  ;;  %v260_v35 = vld [vmem:[%s5396_s2 + $0x30] sm:$0xff]  ;;  %v265_v36 = vld [vmem:[%s5396_s2 + $0x58] sm:$0xff]  ;;  %s3861_s14 = smov 120   ;;  %vm1272_vm13 = vcmask 998400   ;;  %vm1375_vm14 = vcmask 990208  }
  0x30   :  { %v262_v37 = vld [vmem:[%s5396_s2 + $0x40] sm:$0xff]  ;;  %v267_v38 = vld [vmem:[%s5396_s2 + $0x68] sm:$0xff]  ;;  %v264_v39 = vld [vmem:[%s5396_s2 + $0x50] sm:$0xff]  ;;  %vm1478_vm15 = vcmask 982016   ;;  %vm1581_vm0 = vcmask 973824  }
  0x31   :  { %v269_v40 = vld [vmem:[%s5396_s2 + $0x78] sm:$0xff]  ;;  %v266_v41 = vld [vmem:[%s5396_s2 + $0x60] sm:$0xff]  ;;  %v268_v42 = vld [vmem:[%s5396_s2 + $0x70] sm:$0xff] }
  0x32   :  { %97 = vrot.lane.b32.xlu0 %v94_v11, %s3852_s18  ;;  %99 = vrot.lane.b32.xlu1 %v93_v9, %s3852_s18  ;;  %v270_v43 = vld [vmem:[%s5396_s2 + $0x80] sm:$0xff]  ;;  %s3859_s2 = smov 122  }
  0x9c   :  { %v77_v12 = vpop.permute.xlu1 %76  ;;  %v73_v13 = vpop.permute.xlu0 %72 }
  0x9d   :  { %86 = vst.msk [vmem:[#allocation2 + $0x20] sm:$0x7] %vm85_vm1, %v77_v12  ;;  %vm1684_vm1 = vcmask 654336  }
  0x9e   :  { %82 = vst.msk [vmem:[#allocation2] sm:$0xf8] %vm81_vm2, %v73_v13 }
  0xa0   :  { %v96_v14 = vpop.permute.xlu0 %95  ;;  %v75_v15 = vpop.permute.xlu1 %74 }
  0xa1   :  { %105 = vst.msk [vmem:[#allocation2] sm:$0xf8] %vm104_vm3, %v96_v14 }
  0xa2   :  { %84 = vst.msk [vmem:[#allocation2 + $0x10] sm:$0xff] %vm83_vm4, %v75_v15  ;;  %vm2219_vm4 = vcmask 359424  }
  0xa4   :  { %v98_v16 = vpop.permute.xlu0 %97  ;;  %v100_v17 = vpop.permute.xlu1 %99 }
  0xa5   :  { %107 = vst.msk [vmem:[#allocation2 + $0x10] sm:$0xff] %vm106_vm5, %v98_v16  ;;  %vm2261_vm5 = vcmask 1041409  }
  0xa6   :  { %109 = vst.msk [vmem:[#allocation2 + $0x20] sm:$0x7] %vm108_vm6, %v100_v17  ;;  %vm2264_vm6 = vcmask 1042434  }
  0xa8   :  { %v113_v18 = vld [vmem:[#allocation2] sm:$0xff] }
  0xa9   :  { %v2924_v19 = vpack.i.bf16 %v3849_v0, %v113_v18 }
  0xab   :  { %2925 = vrot.lane.b32.xlu0 %v2924_v19, %s3853_s0 }
  0xac   :  { %v115_v20 = vld [vmem:[#allocation2 + $0x10] sm:$0xff] }
  0xad   :  { %v3959_v21 = vld [vmem:[#allocation2 + $0x20] sm:$0xff]  ;;  %v2934_v22 = vpack.i.bf16 %v3849_v0, %v115_v20  ;;  %v2691_v24 = vpack.c.bf16 %v115_v20, %v113_v18 }
  0xae   :  { %v2929_v23 = vpack.i.bf16 %v3849_v0, %v3959_v21 }
  0xaf   :  { %2935 = vrot.lane.b32.xlu1 %v2934_v22, %s3853_s0  ;;  %2692 = vmatpush1.bf16.msra.mxu0 %v2691_v24 }
  0xb0   :  { %2930 = vrot.lane.b32.xlu0 %v2929_v23, %s3853_s0  ;;  %2693 = vmatprep.subr.bf16.mxu0 %v3851_v10 }
  0xb3   :  { %2940 = vrot.lane.b32.xlu1 %v2924_v19, %s3854_s19 }
  0xb4   :  { %2950 = vrot.lane.b32.xlu0 %v2934_v22, %s3854_s19 }
  0xb7   :  { %2945 = vrot.lane.b32.xlu1 %v2929_v23, %s3854_s19 }
  0xb8   :  { %2955 = vrot.lane.b32.xlu0 %v2924_v19, %s3855_s20 }
  0xbb   :  { %2965 = vrot.lane.b32.xlu1 %v2934_v22, %s3855_s20 }
  0xbc   :  { %2960 = vrot.lane.b32.xlu0 %v2929_v23, %s3855_s20 }
  0xbf   :  { %2970 = vrot.lane.b32.xlu1 %v2924_v19, %s3856_s21 }
  0xc0   :  { %2980 = vrot.lane.b32.xlu0 %v2934_v22, %s3856_s21 }
  0xc3   :  { %2975 = vrot.lane.b32.xlu1 %v2929_v23, %s3856_s21 }
  0xc4   :  { %2985 = vrot.lane.b32.xlu0 %v2924_v19, %s3857_s22 }
  0xc7   :  { %2990 = vrot.lane.b32.xlu1 %v2934_v22, %s3857_s22 }
  0xc8   :  { %2995 = vrot.lane.b32.xlu0 %v2929_v23, %s3857_s22 }
  0xcb   :  { %273 = vperm.xlu1 %2999, %v254_v27  }
  0xcc   :  { %278 = vperm.xlu0 %3000, %v255_v32  }
  0xcf   :  { %283 = vperm.xlu1 %2999, %v256_v28  }
  0xd0   :  { %293 = vperm.xlu0 %3000, %v258_v33  }
  0xd3   :  { %288 = vperm.xlu1 %2999, %v257_v29  }
  0xd4   :  { %303 = vperm.xlu0 %3000, %v260_v35  }
  0xd7   :  { %298 = vperm.xlu1 %2999, %v259_v30  }
  0xd8   :  { %313 = vperm.xlu0 %3000, %v262_v37  }
  0xdb   :  { %308 = vperm.xlu1 %2999, %v261_v31  }
  0xdc   :  { %323 = vperm.xlu0 %3000, %v264_v39  }
  0xdf   :  { %318 = vperm.xlu1 %2999, %v263_v34  }
  0xe0   :  { %333 = vperm.xlu0 %3000, %v266_v41  }
  0xe3   :  { %328 = vperm.xlu1 %2999, %v265_v36  }
  0xe4   :  { %343 = vperm.xlu0 %3000, %v268_v42  }
  0xe7   :  { %338 = vperm.xlu1 %2999, %v267_v38  }
  0xe8   :  { %353 = vperm.xlu0 %3000, %v270_v43  }
  0xeb   :  { %348 = vperm.xlu1 %2999, %v269_v40  }
 0x11d   :  { %v2926_v44 = vpop.permute.xlu0 %2925 }
 0x11e   :  { %v2928_v45 = vunpack.i.h.bf16 %v2926_v44  ;;  %v2927_v46 = vunpack.i.l.bf16 %v2926_v44 }
 0x120   :  { %v138_v47 = vsel %vm137_vm8, %v2927_v46, %v2928_v45 }
 0x121   :  { %v2936_v48 = vpop.permute.xlu1 %2935  ;;  %v2694_v50 = vpack.c.bf16 %v138_v47, %v3959_v21 }
 0x122   :  { %v2931_v49 = vpop.permute.xlu0 %2930  ;;  %v2938_v51 = vunpack.i.h.bf16 %v2936_v48  ;;  %v2937_v52 = vunpack.i.l.bf16 %v2936_v48 }
 0x123   :  { %v2933_v53 = vunpack.i.h.bf16 %v2931_v49  ;;  %v2932_v54 = vunpack.i.l.bf16 %v2931_v49  ;;  %2695 = vmatpush1.bf16.msra.mxu0 %v2694_v50 }
 0x124   :  { %2696 = vmatprep.subr.bf16.mxu0 %v3851_v10  ;;  %v139_v55 = vsel %vm137_vm8, %v2937_v52, %v2938_v51  ;;  %v220_v51 = vld [vmem:[#allocation4] sm:$0xff]  ;;  %v223_v52 = vld [vmem:[#allocation4 + $0x18] sm:$0xff] }
 0x125   :  { %v140_v56 = vsel %vm137_vm8, %v2932_v54, %v2933_v53  ;;  %v2941_v57 = vpop.permute.xlu1 %2940  ;;  %v222_v53 = vld [vmem:[#allocation4 + $0x10] sm:$0xff]  ;;  %v225_v54 = vld [vmem:[#allocation4 + $0x28] sm:$0xff] }
 0x126   :  { %v2951_v58 = vpop.permute.xlu0 %2950  ;;  %v2697_v59 = vpack.c.bf16 %v140_v56, %v139_v55  ;;  %v2943_v60 = vunpack.i.h.bf16 %v2941_v57  ;;  %v2942_v61 = vunpack.i.l.bf16 %v2941_v57  ;;  %v224_v55 = vld [vmem:[#allocation4 + $0x20] sm:$0xff]  ;;  %v227_v56 = vld [vmem:[#allocation4 + $0x38] sm:$0xff]  ;;  %v229_v57 = vld [vmem:[#allocation4 + $0x48] sm:$0xff] }
 0x127   :  { %v2953_v62 = vunpack.i.h.bf16 %v2951_v58  ;;  %v2952_v63 = vunpack.i.l.bf16 %v2951_v58  ;;  %v228_v58 = vld [vmem:[#allocation4 + $0x40] sm:$0xff] }
 0x128   :  { %2698 = vmatpush1.bf16.msra.mxu0 %v2697_v59  ;;  %v157_v1 = vsel %vm156_vm9, %v2942_v61, %v2943_v60  ;;  %v231_v59 = vld [vmem:[#allocation4 + $0x58] sm:$0xff]  ;;  %v230_v60 = vld [vmem:[#allocation4 + $0x50] sm:$0xff]  ;;  %v233_v61 = vld [vmem:[#allocation4 + $0x68] sm:$0xff] }
 0x129   :  { %2699 = vmatprep.subr.bf16.mxu0 %v3851_v10  ;;  %v158_v2 = vsel %vm156_vm9, %v2952_v63, %v2953_v62  ;;  %v2946_v3 = vpop.permute.xlu1 %2945  ;;  %v232_v62 = vld [vmem:[#allocation4 + $0x60] sm:$0xff]  ;;  %v235_v63 = vld [vmem:[#allocation4 + $0x78] sm:$0xff] }
 0x12a   :  { %v2956_v4 = vpop.permute.xlu0 %2955  ;;  %v2700_v5 = vpack.c.bf16 %v158_v2, %v157_v1  ;;  %v2948_v6 = vunpack.i.h.bf16 %v2946_v3  ;;  %v2947_v7 = vunpack.i.l.bf16 %v2946_v3  ;;  %v234_v1 = vld [vmem:[#allocation4 + $0x70] sm:$0xff]  ;;  %v237_v2 = vld [vmem:[#allocation4 + $0x88] sm:$0xff]  ;;  %v236_v3 = vld [vmem:[#allocation4 + $0x80] sm:$0xff] }
 0x12b   :  { %v2958_v8 = vunpack.i.h.bf16 %v2956_v4  ;;  %v2957_v9 = vunpack.i.l.bf16 %v2956_v4  ;;  %v239_v4 = vld [vmem:[#allocation4 + $0x98] sm:$0xff] }
 0x12c   :  { %2701 = vmatpush1.bf16.msra.mxu0 %v2700_v5  ;;  %v159_v11 = vsel %vm156_vm9, %v2947_v7, %v2948_v6  ;;  %v238_v5 = vld [vmem:[#allocation4 + $0x90] sm:$0xff]  ;;  %v241_v6 = vld [vmem:[#allocation4 + $0xa8] sm:$0xff]  ;;  %v240_v7 = vld [vmem:[#allocation4 + $0xa0] sm:$0xff] }
 0x12d   :  { %2702 = vmatprep.subr.bf16.mxu0 %v3851_v10  ;;  %v176_v12 = vsel %vm175_vm10, %v2957_v9, %v2958_v8  ;;  %v2966_v13 = vpop.permute.xlu1 %2965  ;;  %v243_v8 = vld [vmem:[#allocation4 + $0xb8] sm:$0xff]  ;;  %v242_v9 = vld [vmem:[#allocation4 + $0xb0] sm:$0xff] }
 0x12e   :  { %v2961_v14 = vpop.permute.xlu0 %2960  ;;  %v2703_v15 = vpack.c.bf16 %v176_v12, %v159_v11  ;;  %v2968_v16 = vunpack.i.h.bf16 %v2966_v13  ;;  %v2967_v17 = vunpack.i.l.bf16 %v2966_v13  ;;  %v245_v11 = vld [vmem:[#allocation4 + $0xc8] sm:$0xff]  ;;  %v244_v12 = vld [vmem:[#allocation4 + $0xc0] sm:$0xff]  ;;  %v247_v13 = vld [vmem:[#allocation4 + $0xd8] sm:$0xff] }
 0x12f   :  { %v2963_v18 = vunpack.i.h.bf16 %v2961_v14  ;;  %v2962_v19 = vunpack.i.l.bf16 %v2961_v14  ;;  %v246_v14 = vld [vmem:[#allocation4 + $0xd0] sm:$0xff] }
 0x130   :  { %2704 = vmatpush1.bf16.msra.mxu0 %v2703_v15  ;;  %v177_v20 = vsel %vm175_vm10, %v2967_v17, %v2968_v16  ;;  %v249_v15 = vld [vmem:[#allocation4 + $0xe8] sm:$0xff]  ;;  %v248_v16 = vld [vmem:[#allocation4 + $0xe0] sm:$0xff]  ;;  %v251_v17 = vld [vmem:[#allocation4 + $0xf8] sm:$0xff] }
 0x131   :  { %2705 = vmatprep.subr.bf16.mxu0 %v3851_v10  ;;  %v178_v21 = vsel %vm175_vm10, %v2962_v19, %v2963_v18  ;;  %v2971_v22 = vpop.permute.xlu1 %2970  ;;  %v250_v18 = vld [vmem:[#allocation4 + $0xf0] sm:$0xff]  ;;  %v253_v19 = vld [vmem:[#allocation4 + $0x108] sm:$0xff] }
 0x132   :  { %v2981_v23 = vpop.permute.xlu0 %2980  ;;  %v2706_v24 = vpack.c.bf16 %v178_v21, %v177_v20  ;;  %v2973_v25 = vunpack.i.h.bf16 %v2971_v22  ;;  %v2972_v27 = vunpack.i.l.bf16 %v2971_v22  ;;  %v252_v20 = vld [vmem:[#allocation4 + $0x100] sm:$0xff] }
 0x133   :  { %v2983_v28 = vunpack.i.h.bf16 %v2981_v23  ;;  %v2982_v29 = vunpack.i.l.bf16 %v2981_v23 }
 0x134   :  { %2707 = vmatpush1.bf16.msra.mxu0 %v2706_v24  ;;  %v195_v30 = vsel %vm194_vm11, %v2972_v27, %v2973_v25 }
 0x135   :  { %2708 = vmatprep.subr.bf16.mxu0 %v3851_v10  ;;  %v196_v31 = vsel %vm194_vm11, %v2982_v29, %v2983_v28  ;;  %v2976_v32 = vpop.permute.xlu1 %2975 }
 0x136   :  { %v2986_v33 = vpop.permute.xlu0 %2985  ;;  %v2709_v34 = vpack.c.bf16 %v196_v31, %v195_v30  ;;  %v2978_v35 = vunpack.i.h.bf16 %v2976_v32  ;;  %v2977_v36 = vunpack.i.l.bf16 %v2976_v32 }
 0x137   :  { %v2988_v37 = vunpack.i.h.bf16 %v2986_v33  ;;  %v2987_v38 = vunpack.i.l.bf16 %v2986_v33 }
 0x138   :  { %2710 = vmatpush1.bf16.msra.mxu0 %v2709_v34  ;;  %v197_v39 = vsel %vm194_vm11, %v2977_v36, %v2978_v35 }
 0x139   :  { %2711 = vmatprep.subr.bf16.mxu0 %v3851_v10  ;;  %v214_v40 = vsel %vm213_vm12, %v2987_v38, %v2988_v37  ;;  %v2991_v41 = vpop.permute.xlu1 %2990 }
 0x13a   :  { %v2996_v42 = vpop.permute.xlu0 %2995  ;;  %v2712_v43 = vpack.c.bf16 %v214_v40, %v197_v39  ;;  %v2993_v44 = vunpack.i.h.bf16 %v2991_v41  ;;  %v2992_v45 = vunpack.i.l.bf16 %v2991_v41 }
 0x13b   :  { %v2998_v46 = vunpack.i.h.bf16 %v2996_v42  ;;  %v2997_v47 = vunpack.i.l.bf16 %v2996_v42 }
 0x13c   :  { %2713 = vmatpush1.bf16.msra.mxu0 %v2712_v43  ;;  %v215_v48 = vsel %vm213_vm12, %v2992_v45, %v2993_v44 }
 0x13d   :  { %2714 = vmatprep.subr.bf16.mxu0 %v3851_v10  ;;  %v216_v49 = vsel %vm213_vm12, %v2997_v47, %v2998_v46  ;;  %v226_v10 = vld [vmem:[#allocation4 + $0x30] sm:$0xff] }
 0x13e   :  { %v2715_v50 = vpack.c.bf16 %v216_v49, %v215_v48 }
 0x140   :  { %2716 = vmatpush1.bf16.msra.mxu0 %v2715_v50 }
 0x143   :  { %473 = vmatmul.mubr.f32.vlgmr.msra.gmra.mrb[0].mxu0 %v220_v51 }
 0x144   :  { %2410 = vmatprep.mubr.msk.f32.mxu0 %vm356_vm7, %v223_v52 }
 0x147   :  { %478 = vmatmul.mubr.f32.gmra.mrb[2].mxu0 %v222_v53 }
 0x148   :  { %2411 = vmatprep.mubr.msk.f32.mxu0 %vm356_vm7, %v225_v54 }
 0x14a   :  { %v274_v21 = vpop.permute.xlu1 %273 }
 0x14b   :  { %483 = vmatmul.mubr.f32.gmra.mrb[4].mxu0 %v224_v55  ;;  %v279_v27 = vpop.permute.xlu0 %278 }
 0x14c   :  { %2412 = vmatprep.mubr.msk.f32.mxu0 %vm356_vm7, %v227_v56 }
 0x14e   :  { %v284_v32 = vpop.permute.xlu1 %283 }
 0x14f   :  { %488 = vmatmul.mubr.f32.gmra.mrb[6].mxu0 %v226_v10  ;;  %v294_v48 = vpop.permute.xlu0 %293 }
 0x150   :  { %2413 = vmatprep.mubr.msk.f32.mxu0 %vm356_vm7, %v229_v57 }
 0x152   :  { %v289_v38 = vpop.permute.xlu1 %288 }
 0x153   :  { %493 = vmatmul.mubr.f32.gmra.mrb[8].mxu0 %v228_v58  ;;  %v304_v58 = vpop.permute.xlu0 %303 }
 0x154   :  { %2414 = vmatprep.mubr.msk.f32.mxu0 %vm356_vm7, %v231_v59 }
 0x156   :  { %v299_v50 = vpop.permute.xlu1 %298 }
 0x157   :  { %498 = vmatmul.mubr.f32.gmra.mrb[10].mxu0 %v230_v60 }
 0x158   :  { %2415 = vmatprep.mubr.msk.f32.mxu0 %vm356_vm7, %v233_v61 }
 0x15a   :  { %v309_v60 = vpop.permute.xlu1 %308 }
 0x15b   :  { %503 = vmatmul.mubr.f32.gmra.mrb[12].mxu0 %v232_v62 }
 0x15c   :  { %2416 = vmatprep.mubr.msk.f32.mxu0 %vm356_vm7, %v235_v63 }
 0x15f   :  { %508 = vmatmul.mubr.f32.gmra.mrb[14].mxu0 %v234_v1 }
 0x160   :  { %2417 = vmatprep.mubr.msk.f32.mxu0 %vm356_vm7, %v237_v2 }
 0x163   :  { %513 = vmatmul.mubr.f32.gmra.mrb[16].mxu0 %v236_v3 }
 0x164   :  { %2418 = vmatprep.mubr.msk.f32.mxu0 %vm356_vm7, %v239_v4 }
 0x167   :  { %518 = vmatmul.mubr.f32.gmra.mrb[18].mxu0 %v238_v5 }
 0x168   :  { %2419 = vmatprep.mubr.msk.f32.mxu0 %vm356_vm7, %v241_v6  ;;  %v1617_v6 = vld [vmem:[#allocation7 + $0x8] sm:$0xff] }
 0x169   :  { %1761 = vmatprep.mubr.f32.mxu1 %v1617_v6 }
 0x16b   :  { %523 = vmatmul.mubr.f32.gmra.mrb[20].mxu0 %v240_v7  ;;  %v314_v7 = vpop.permute.xlu0 %313 }
 0x16c   :  { %2420 = vmatprep.mubr.msk.f32.mxu0 %vm356_vm7, %v243_v8 }
 0x16f   :  { %528 = vmatmul.mubr.f32.gmra.mrb[22].mxu0 %v242_v9  ;;  %v319_v9 = vpop.permute.xlu1 %318 }
 0x170   :  { %2421 = vmatprep.mubr.msk.f32.mxu0 %vm356_vm7, %v245_v11 }
 0x173   :  { %533 = vmatmul.mubr.f32.gmra.mrb[24].mxu0 %v244_v12 }
 0x174   :  { %2422 = vmatprep.mubr.msk.f32.mxu0 %vm356_vm7, %v247_v13 }
 0x177   :  { %538 = vmatmul.mubr.f32.gmra.mrb[26].mxu0 %v246_v14 }
 0x178   :  { %2423 = vmatprep.mubr.msk.f32.mxu0 %vm356_vm7, %v249_v15 }
 0x17b   :  { %543 = vmatmul.mubr.f32.gmra.mrb[28].mxu0 %v248_v16 }
 0x17c   :  { %2424 = vmatprep.mubr.msk.f32.mxu0 %vm356_vm7, %v251_v17 }
 0x17f   :  { %548 = vmatmul.mubr.f32.gmra.mrb[30].mxu0 %v250_v18 }
 0x180   :  { %2425 = vmatprep.mubr.msk.f32.mxu0 %vm356_vm7, %v253_v19  ;;  %v324_v19 = vpop.permute.xlu0 %323  ;;  %vm2267_vm7 = vcmask 1043459  }
 0x183   :  { %553 = vmatmul.mubr.f32.gmra.mrb[32].mxu0 %v252_v20 }
 0x216   :  { %v474_v22 = vpop.f32.mrb[0].mxu0 }
 0x217   :  { %v475_v23 = vadd.f32 %v474_v22, %v274_v21  ;;  %v476_v24 = vpop.f32.mrb[1].mxu0  ;;  %v329_v21 = vpop.permute.xlu1 %328 }
 0x219   :  { %v4072_v25 = vmax.f32 %v475_v23, 0.0 }
 0x21a   :  { %v479_v28 = vpop.f32.mrb[2].mxu0 }
 0x21b   :  { %v480_v29 = vadd.f32 %v479_v28, %v279_v27  ;;  %v481_v30 = vpop.f32.mrb[3].mxu0  ;;  %v3006_v31 = vpack.i.bf16 %v3849_v0, %v4072_v25 }
 0x21d   :  { %v4076_v33 = vmax.f32 %v480_v29, 0.0  ;;  %3007 = vrot.lane.b32.xlu0 %v3006_v31, %s3854_s19  ;;  %3002 = vrot.lane.b32.xlu1 %v3006_v31, %s3853_s0 }
 0x21e   :  { %v484_v34 = vpop.f32.mrb[4].mxu0 }
 0x21f   :  { %v486_v35 = vpop.f32.mrb[5].mxu0  ;;  %v2719_v36 = vpack.c.bf16 %v4076_v33, %v4072_v25  ;;  %v485_v37 = vadd.f32 %v484_v34, %v284_v32  ;;  %v3036_v44 = vpack.i.bf16 %v3849_v0, %v4076_v33  ;;  %v334_v34 = vpop.permute.xlu0 %333 }
 0x221   :  { %3022 = vrot.lane.b32.xlu0 %v3006_v31, %s3856_s21  ;;  %3012 = vrot.lane.b32.xlu1 %v3006_v31, %s3855_s20  ;;  %v4084_v42 = vmax.f32 %v485_v37, 0.0  ;;  %v339_v37 = vpop.permute.xlu1 %338 }
 0x222   :  { %v489_v39 = vpop.f32.mrb[6].mxu0 }
 0x223   :  { %v490_v40 = vadd.f32 %v489_v39, %v289_v38  ;;  %v491_v41 = vpop.f32.mrb[7].mxu0  ;;  %v3076_v5 = vpack.i.bf16 %v3849_v0, %v4084_v42 }
 0x225   :  { %v4086_v43 = vmax.f32 %v490_v40, 0.0  ;;  %3032 = vrot.lane.b32.xlu0 %v3006_v31, %s3859_s2  ;;  %3017 = vrot.lane.b32.xlu1 %v3006_v31, %s3857_s22 }
 0x226   :  { %v494_v45 = vpop.f32.mrb[8].mxu0 }
 0x227   :  { %v496_v46 = vpop.f32.mrb[9].mxu0  ;;  %v2723_v47 = vpack.c.bf16 %v4086_v43, %v4084_v42  ;;  %v495_v49 = vadd.f32 %v494_v45, %v294_v48  ;;  %v4138_v27 = vpack.i.bf16 %v3849_v0, %v4086_v43 }
 0x229   :  { %3037 = vrot.lane.b32.xlu0 %v3036_v44, %s3853_s0  ;;  %3027 = vrot.lane.b32.xlu1 %v3006_v31, %s3860_s13  ;;  %v4096_v54 = vmax.f32 %v495_v49, 0.0 }
 0x22a   :  { %v499_v51 = vpop.f32.mrb[10].mxu0 }
 0x22b   :  { %v500_v52 = vadd.f32 %v499_v51, %v299_v50  ;;  %v501_v53 = vpop.f32.mrb[11].mxu0  ;;  %v4167_v48 = vpack.i.bf16 %v3849_v0, %v4096_v54  ;;  %v344_v50 = vpop.permute.xlu0 %343 }
 0x22d   :  { %v4098_v55 = vmax.f32 %v500_v52, 0.0  ;;  %3047 = vrot.lane.b32.xlu0 %v3036_v44, %s3855_s20  ;;  %3042 = vrot.lane.b32.xlu1 %v3036_v44, %s3854_s19  ;;  %v349_v52 = vpop.permute.xlu1 %348 }
 0x22e   :  { %v504_v56 = vpop.f32.mrb[12].mxu0 }
 0x22f   :  { %v506_v10 = vpop.f32.mrb[13].mxu0  ;;  %v2727_v57 = vpack.c.bf16 %v4098_v55, %v4096_v54  ;;  %v505_v59 = vadd.f32 %v504_v56, %v304_v58 }
 0x231   :  { %3057 = vrot.lane.b32.xlu0 %v3036_v44, %s3857_s22  ;;  %3052 = vrot.lane.b32.xlu1 %v3036_v44, %s3856_s21  ;;  %v4106_v1 = vmax.f32 %v505_v59, 0.0 }
 0x232   :  { %v509_v61 = vpop.f32.mrb[14].mxu0 }
 0x233   :  { %v510_v62 = vadd.f32 %v509_v61, %v309_v60  ;;  %v511_v63 = vpop.f32.mrb[15].mxu0  ;;  %v4191_v61 = vpack.i.bf16 %v3849_v0, %v4098_v55 }
 0x235   :  { %v4108_v2 = vmax.f32 %v510_v62, 0.0  ;;  %3067 = vrot.lane.b32.xlu0 %v3036_v44, %s3860_s13  ;;  %3062 = vrot.lane.b32.xlu1 %v3036_v44, %s3859_s2 }
 0x236   :  { %v514_v3 = vpop.f32.mrb[16].mxu0 }
 0x237   :  { %v516_v4 = vpop.f32.mrb[17].mxu0  ;;  %v4116_v8 = vadd.f32 %v514_v3, %v314_v7  ;;  %v4213_v3 = vpack.i.bf16 %v3849_v0, %v4106_v1 }
 0x238   :  { %v4225_v4 = vpack.i.bf16 %v3849_v0, %v4108_v2 }
 0x239   :  { %3077 = vrot.lane.b32.xlu0 %v3076_v5, %s3854_s19  ;;  %3072 = vrot.lane.b32.xlu1 %v3076_v5, %s3853_s0  ;;  %v566_v14 = vmax.f32 %v4116_v8, 0.0  ;;  %v354_v8 = vpop.permute.xlu0 %353 }
 0x23a   :  { %v519_v11 = vpop.f32.mrb[18].mxu0 }
 0x23b   :  { %v520_v12 = vadd.f32 %v519_v11, %v319_v9  ;;  %v521_v13 = vpop.f32.mrb[19].mxu0 }
 0x23d   :  { %v4121_v15 = vmax.f32 %v520_v12, 0.0  ;;  %3092 = vrot.lane.b32.xlu0 %v3076_v5, %s3856_s21  ;;  %3082 = vrot.lane.b32.xlu1 %v3076_v5, %s3855_s20 }
 0x23e   :  { %v524_v16 = vpop.f32.mrb[20].mxu0 }
 0x23f   :  { %v526_v17 = vpop.f32.mrb[21].mxu0  ;;  %v4128_v18 = vpack.c.bf16 %v4121_v15, %v566_v14  ;;  %v4130_v20 = vadd.f32 %v524_v16, %v324_v19  ;;  %v4258_v7 = vpack.i.bf16 %v3849_v0, %v4121_v15 }
 0x241   :  { %3102 = vrot.lane.b32.xlu0 %v3076_v5, %s3859_s2  ;;  %3087 = vrot.lane.b32.xlu1 %v3076_v5, %s3857_s22  ;;  %v568_v28 = vmax.f32 %v4130_v20, 0.0 }
 0x242   :  { %v529_v22 = vpop.f32.mrb[22].mxu0 }
 0x243   :  { %v4134_v23 = vadd.f32 %v529_v22, %v329_v21  ;;  %v531_v24 = vpop.f32.mrb[23].mxu0  ;;  %v4279_v13 = vpack.i.bf16 %v3849_v0, %v568_v28 }
 0x245   :  { %v569_v29 = vmax.f32 %v4134_v23, 0.0  ;;  %3107 = vrot.lane.b32.xlu0 %v4138_v27, %s3853_s0  ;;  %3097 = vrot.lane.b32.xlu1 %v3076_v5, %s3860_s13  ;;  %v4242_v5 = vpack.i.bf16 %v3849_v0, %v566_v14 }
 0x246   :  { %v534_v30 = vpop.f32.mrb[24].mxu0 }
 0x247   :  { %v536_v31 = vpop.f32.mrb[25].mxu0  ;;  %v4149_v32 = vpack.c.bf16 %v569_v29, %v568_v28  ;;  %v4151_v35 = vadd.f32 %v534_v30, %v334_v34 }
 0x249   :  { %3117 = vrot.lane.b32.xlu0 %v4138_v27, %s3855_s20  ;;  %3112 = vrot.lane.b32.xlu1 %v4138_v27, %s3854_s19  ;;  %v570_v41 = vmax.f32 %v4151_v35, 0.0 }
 0x24a   :  { %v539_v38 = vpop.f32.mrb[26].mxu0 }
 0x24b   :  { %v4157_v39 = vadd.f32 %v539_v38, %v339_v37  ;;  %v541_v40 = vpop.f32.mrb[27].mxu0  ;;  %v4321_v37 = vpack.i.bf16 %v3849_v0, %v569_v29 }
 0x24d   :  { %v571_v44 = vmax.f32 %v4157_v39, 0.0  ;;  %3127 = vrot.lane.b32.xlu0 %v4138_v27, %s3857_s22  ;;  %3122 = vrot.lane.b32.xlu1 %v4138_v27, %s3856_s21 }
 0x24e   :  { %v544_v45 = vpop.f32.mrb[28].mxu0 }
 0x24f   :  { %v546_v46 = vpop.f32.mrb[29].mxu0  ;;  %v4173_v49 = vpack.c.bf16 %v571_v44, %v570_v41  ;;  %v4175_v51 = vadd.f32 %v544_v45, %v344_v50 }
 0x251   :  { %3137 = vrot.lane.b32.xlu0 %v4167_v48, %s3854_s19  ;;  %3132 = vrot.lane.b32.xlu1 %v4167_v48, %s3853_s0  ;;  %v572_v58 = vmax.f32 %v4175_v51, 0.0 }
 0x252   :  { %v549_v53 = vpop.f32.mrb[30].mxu0 }
 0x253   :  { %v4181_v56 = vadd.f32 %v549_v53, %v349_v52  ;;  %v551_v10 = vpop.f32.mrb[31].mxu0 }
 0x255   :  { %v573_v59 = vmax.f32 %v4181_v56, 0.0  ;;  %3152 = vrot.lane.b32.xlu0 %v4167_v48, %s3856_s21  ;;  %3142 = vrot.lane.b32.xlu1 %v4167_v48, %s3855_s20 }
 0x256   :  { %v554_v60 = vpop.f32.mrb[32].mxu0 }
 0x257   :  { %v556_v62 = vpop.f32.mrb[33].mxu0  ;;  %v4197_v63 = vpack.c.bf16 %v573_v59, %v572_v58  ;;  %v4268_v9 = vadd.f32 %v554_v60, %v354_v8 }
 0x259   :  { %3157 = vrot.lane.b32.xlu0 %v4191_v61, %s3853_s0  ;;  %3147 = vrot.lane.b32.xlu1 %v4167_v48, %s3857_s22  ;;  %v5404_v17 = vmax.f32 %v4268_v9, 0.0 }
 0x25d   :  { %3167 = vrot.lane.b32.xlu0 %v4191_v61, %s3855_s20  ;;  %3162 = vrot.lane.b32.xlu1 %v4191_v61, %s3854_s19 }
 0x261   :  { %3177 = vrot.lane.b32.xlu0 %v4191_v61, %s3857_s22  ;;  %3172 = vrot.lane.b32.xlu1 %v4191_v61, %s3856_s21 }
 0x265   :  { %3187 = vrot.lane.b32.xlu0 %v4213_v3, %s3854_s19  ;;  %3182 = vrot.lane.b32.xlu1 %v4213_v3, %s3853_s0 }
 0x269   :  { %3202 = vrot.lane.b32.xlu0 %v4213_v3, %s3856_s21  ;;  %3192 = vrot.lane.b32.xlu1 %v4213_v3, %s3855_s20 }
 0x26d   :  { %3207 = vrot.lane.b32.xlu0 %v4225_v4, %s3853_s0  ;;  %3197 = vrot.lane.b32.xlu1 %v4213_v3, %s3857_s22 }
 0x271   :  { %3217 = vrot.lane.b32.xlu0 %v4225_v4, %s3855_s20  ;;  %3212 = vrot.lane.b32.xlu1 %v4225_v4, %s3854_s19 }
 0x275   :  { %3227 = vrot.lane.b32.xlu0 %v4225_v4, %s3857_s22  ;;  %3222 = vrot.lane.b32.xlu1 %v4225_v4, %s3856_s21 }
 0x279   :  { %3237 = vrot.lane.b32.xlu0 %v4242_v5, %s3854_s19  ;;  %3232 = vrot.lane.b32.xlu1 %v4242_v5, %s3853_s0 }
 0x27d   :  { %3252 = vrot.lane.b32.xlu0 %v4242_v5, %s3856_s21  ;;  %3242 = vrot.lane.b32.xlu1 %v4242_v5, %s3855_s20 }
 0x281   :  { %3257 = vrot.lane.b32.xlu0 %v4242_v5, %s3861_s14  ;;  %3247 = vrot.lane.b32.xlu1 %v4242_v5, %s3857_s22 }
 0x285   :  { %3262 = vrot.lane.b32.xlu0 %v4258_v7, %s3853_s0  ;;  %3267 = vrot.lane.b32.xlu1 %v4258_v7, %s3854_s19 }
 0x289   :  { %3272 = vrot.lane.b32.xlu0 %v4258_v7, %s3855_s20  ;;  %3277 = vrot.lane.b32.xlu1 %v4258_v7, %s3856_s21 }
 0x28d   :  { %3282 = vrot.lane.b32.xlu0 %v4258_v7, %s3857_s22  ;;  %3287 = vrot.lane.b32.xlu1 %v4258_v7, %s3861_s14 }
 0x28f   :  { %v4274_v11 = vpop.permute.xlu0 %3007  ;;  %v3003_v12 = vpop.permute.xlu1 %3002 }
 0x290   :  { %v3005_v14 = vunpack.i.h.bf16 %v3003_v12  ;;  %v3004_v16 = vunpack.i.l.bf16 %v3003_v12 }
 0x291   :  { %3292 = vrot.lane.b32.xlu0 %v4258_v7, %s3860_s13  ;;  %3297 = vrot.lane.b32.xlu1 %v4279_v13, %s3853_s0 }
 0x292   :  { %v762_v19 = vsel %vm137_vm8, %v3004_v16, %v3005_v14  ;;  %v4358_v14 = vpack.i.bf16 %v3849_v0, %v570_v41 }
 0x293   :  { %v4287_v21 = vpop.permute.xlu0 %3022  ;;  %v4289_v22 = vpop.permute.xlu1 %3012  ;;  %v2717_v20 = vpack.c.bf16 %v762_v19, %v5404_v17 }
 0x295   :  { %3302 = vrot.lane.b32.xlu0 %v4279_v13, %s3854_s19  ;;  %3307 = vrot.lane.b32.xlu1 %v4279_v13, %s3855_s20 }
 0x296   :  { %2718 = vmatprep.subr.bf16.mxu1 %v2717_v20 }
 0x297   :  { %2720 = vmatpush3.bf16.msra.mxu1 %v2719_v36  ;;  %v4300_v24 = vpop.permute.xlu0 %3032  ;;  %v4302_v28 = vpop.permute.xlu1 %3017 }
 0x299   :  { %3312 = vrot.lane.b32.xlu0 %v4279_v13, %s3859_s2  ;;  %3317 = vrot.lane.b32.xlu1 %v4279_v13, %s3857_s22 }
 0x29b   :  { %v3038_v30 = vpop.permute.xlu0 %3037  ;;  %v4308_v31 = vpop.permute.xlu1 %3027 }
 0x29c   :  { %v3040_v45 = vunpack.i.h.bf16 %v3038_v30  ;;  %v3039_v46 = vunpack.i.l.bf16 %v3038_v30 }
 0x29d   :  { %3322 = vrot.lane.b32.xlu0 %v4279_v13, %s3856_s21  ;;  %3327 = vrot.lane.b32.xlu1 %v4279_v13, %s3860_s13 }
 0x29e   :  { %v763_v60 = vsel %vm137_vm8, %v3039_v46, %v3040_v45 }
 0x29f   :  { %v4314_v36 = vpop.permute.xlu0 %3047  ;;  %v4316_v34 = vpop.permute.xlu1 %3042 }
 0x2a1   :  { %3332 = vrot.lane.b32.xlu0 %v4279_v13, %s3861_s14  ;;  %3342 = vrot.lane.b32.xlu1 %v4321_v37, %s3854_s19 }
 0x2a3   :  { %v4327_v38 = vpop.permute.xlu0 %3057  ;;  %v4329_v40 = vpop.permute.xlu1 %3052 }
 0x2a5   :  { %3337 = vrot.lane.b32.xlu0 %v4321_v37, %s3853_s0  ;;  %3352 = vrot.lane.b32.xlu1 %v4321_v37, %s3859_s2 }
 0x2a7   :  { %v4335_v23 = vpop.permute.xlu0 %3067  ;;  %v4337_v29 = vpop.permute.xlu1 %3062 }
 0x2a9   :  { %3347 = vrot.lane.b32.xlu0 %v4321_v37, %s3855_s20  ;;  %3362 = vrot.lane.b32.xlu1 %v4321_v37, %s3856_s21 }
 0x2ab   :  { %v4343_v50 = vpop.permute.xlu0 %3077  ;;  %v3073_v52 = vpop.permute.xlu1 %3072 }
 0x2ac   :  { %v3075_v53 = vunpack.i.h.bf16 %v3073_v52  ;;  %v3074_v10 = vunpack.i.l.bf16 %v3073_v52  ;;  %v4396_v52 = vpack.i.bf16 %v3849_v0, %v571_v44 }
 0x2ad   :  { %3357 = vrot.lane.b32.xlu0 %v4321_v37, %s3857_s22  ;;  %3367 = vrot.lane.b32.xlu1 %v4321_v37, %s3861_s14 }
 0x2ae   :  { %v764_v62 = vsel %vm137_vm8, %v3074_v10, %v3075_v53 }
 0x2af   :  { %v4351_v8 = vpop.permute.xlu0 %3092  ;;  %v4353_v12 = vpop.permute.xlu1 %3082  ;;  %v2721_v16 = vpack.c.bf16 %v764_v62, %v763_v60 }
 0x2b1   :  { %3372 = vrot.lane.b32.xlu0 %v4321_v37, %s3860_s13  ;;  %3377 = vrot.lane.b32.xlu1 %v4358_v14, %s3853_s0 }
 0x2b2   :  { %2722 = vmatprep.subr.bf16.mxu1 %v2721_v16 }
 0x2b3   :  { %2724 = vmatpush3.bf16.msra.mxu1 %v2723_v47  ;;  %v4367_v19 = vpop.permute.xlu0 %3102  ;;  %v4369_v20 = vpop.permute.xlu1 %3087 }
 0x2b5   :  { %3382 = vrot.lane.b32.xlu0 %v4358_v14, %s3854_s19  ;;  %3387 = vrot.lane.b32.xlu1 %v4358_v14, %s3855_s20 }
 0x2b7   :  { %v3108_v35 = vpop.permute.xlu0 %3107  ;;  %v4375_v41 = vpop.permute.xlu1 %3097 }
 0x2b8   :  { %v3110_v53 = vunpack.i.h.bf16 %v3108_v35  ;;  %v3109_v10 = vunpack.i.l.bf16 %v3108_v35 }
 0x2b9   :  { %3392 = vrot.lane.b32.xlu0 %v4358_v14, %s3856_s21  ;;  %3397 = vrot.lane.b32.xlu1 %v4358_v14, %s3857_s22 }
 0x2ba   :  { %v765_v0 = vsel %vm137_vm8, %v3109_v10, %v3110_v53  ;;  %v4423_v10 = vld [vmem:[#allocation2 + $0x8] sm:$0xff] }
 0x2bb   :  { %v4381_v47 = vpop.permute.xlu0 %3117  ;;  %v4383_v30 = vpop.permute.xlu1 %3112 }
 0x2bd   :  { %3402 = vrot.lane.b32.xlu0 %v4358_v14, %s3859_s2  ;;  %3407 = vrot.lane.b32.xlu1 %v4358_v14, %s3860_s13 }
 0x2bf   :  { %v4389_v45 = vpop.permute.xlu0 %3127  ;;  %v4391_v46 = vpop.permute.xlu1 %3122 }
 0x2c0   :  { %5443 = vst [vmem:[#allocation13_spill] sm:$0xff] %v4389_v45  ;;  %5444 = vst [vmem:[#allocation14_spill] sm:$0xff] %v4391_v46 }
 0x2c1   :  { %3412 = vrot.lane.b32.xlu0 %v4396_v52, %s3853_s0  ;;  %3417 = vrot.lane.b32.xlu1 %v4396_v52, %s3854_s19 }
 0x2c3   :  { %v4402_v60 = vpop.permute.xlu0 %3137  ;;  %v3133_v62 = vpop.permute.xlu1 %3132 }
 0x2c4   :  { %v3135_v16 = vunpack.i.h.bf16 %v3133_v62  ;;  %v3134_v26 = vunpack.i.l.bf16 %v3133_v62  ;;  %v4428_v62 = vpack.i.bf16 %v4423_v10, %v572_v58 }
 0x2c5   :  { %3427 = vrot.lane.b32.xlu0 %v4396_v52, %s3855_s20  ;;  %3422 = vrot.lane.b32.xlu1 %v4396_v52, %s3856_s21 }
 0x2c6   :  { %v766_v39 = vsel %vm137_vm8, %v3134_v26, %v3135_v16 }
 0x2c7   :  { %v4410_v44 = vpop.permute.xlu0 %3152  ;;  %v4412_v17 = vpop.permute.xlu1 %3142  ;;  %v2725_v35 = vpack.c.bf16 %v766_v39, %v765_v0 }
 0x2c8   :  { %5445 = vst [vmem:[#allocation15_spill] sm:$0xff] %v4410_v44  ;;  %v4455_v44 = vpack.i.bf16 %v4423_v10, %v573_v59  ;;  %v5451_v59 = vpack.c.bf16 %v4108_v2, %v4106_v1 }
 0x2c9   :  { %3437 = vrot.lane.b32.xlu0 %v4396_v52, %s3857_s22  ;;  %3432 = vrot.lane.b32.xlu1 %v4396_v52, %s3859_s2 }
 0x2ca   :  { %2726 = vmatprep.subr.bf16.mxu1 %v2725_v35 }
 0x2cb   :  { %2728 = vmatpush3.bf16.msra.mxu1 %v2727_v57  ;;  %v3158_v53 = vpop.permute.xlu0 %3157  ;;  %v4421_v26 = vpop.permute.xlu1 %3147 }
 0x2cc   :  { %5446 = vst [vmem:[#allocation16_spill] sm:$0xff] %v4421_v26  ;;  %v3160_v58 = vunpack.i.h.bf16 %v3158_v53  ;;  %v3159_v0 = vunpack.i.l.bf16 %v3158_v53 }
 0x2cd   :  { %3447 = vrot.lane.b32.xlu0 %v4428_v62, %s3854_s19  ;;  %3442 = vrot.lane.b32.xlu1 %v4428_v62, %s3853_s0 }
 0x2cf   :  { %v4434_v6 = vpop.permute.xlu0 %3167  ;;  %v4436_v16 = vpop.permute.xlu1 %3162 }
 0x2d1   :  { %3457 = vrot.lane.b32.xlu0 %v4428_v62, %s3856_s21  ;;  %3452 = vrot.lane.b32.xlu1 %v4428_v62, %s3855_s20 }
 0x2d3   :  { %v4442_v57 = vpop.permute.xlu0 %3177  ;;  %v4444_v51 = vpop.permute.xlu1 %3172 }
 0x2d4   :  { %5447 = vst [vmem:[#allocation17_spill] sm:$0xff] %v4442_v57  ;;  %5448 = vst [vmem:[#allocation18_spill] sm:$0xff] %v4444_v51  ;;  %v767_v51 = vsel %vm137_vm8, %v3159_v0, %v3160_v58 }
 0x2d5   :  { %3467 = vrot.lane.b32.xlu0 %v4428_v62, %s3859_s2  ;;  %3462 = vrot.lane.b32.xlu1 %v4428_v62, %s3857_s22 }
 0x2d7   :  { %v4450_v39 = vpop.permute.xlu0 %3187  ;;  %v3183_v35 = vpop.permute.xlu1 %3182 }
 0x2d8   :  { %5449 = vst [vmem:[#allocation19_spill] sm:$0xff] %v4450_v39  ;;  %v3185_v26 = vunpack.i.h.bf16 %v3183_v35  ;;  %v3184_v57 = vunpack.i.l.bf16 %v3183_v35 }
 0x2d9   :  { %3472 = vrot.lane.b32.xlu0 %v4455_v44, %s3853_s0  ;;  %3477 = vrot.lane.b32.xlu1 %v4455_v44, %s3854_s19 }
 0x2da   :  { %v768_v53 = vsel %vm137_vm8, %v3184_v57, %v3185_v26 }
 0x2db   :  { %v4463_v45 = vpop.permute.xlu0 %3202  ;;  %v4465_v46 = vpop.permute.xlu1 %3192  ;;  %v2729_v56 = vpack.c.bf16 %v768_v53, %v767_v51  ;;  %v5455_v51 = vmax.f32 %v4268_v9, 0.0 }
 0x2dc   :  { %5450 = vst [vmem:[#allocation20_spill] sm:$0xff] %v4463_v45 }
 0x2dd   :  { %3487 = vrot.lane.b32.xlu0 %v4455_v44, %s3855_s20  ;;  %3482 = vrot.lane.b32.xlu1 %v4455_v44, %s3856_s21  ;;  %v4487_v0 = vpack.i.bf16 %v4423_v10, %v5455_v51 }
 0x2de   :  { %2730 = vmatprep.subr.bf16.mxu1 %v2729_v56 }
 0x2df   :  { %2732 = vmatpush3.bf16.msra.mxu1 %v5451_v59  ;;  %v3208_v35 = vpop.permute.xlu0 %3207  ;;  %v4474_v58 = vpop.permute.xlu1 %3197 }
 0x2e0   :  { %5452 = vst [vmem:[#allocation21_spill] sm:$0xff] %v4474_v58  ;;  %v3210_v9 = vunpack.i.h.bf16 %v3208_v35  ;;  %v3209_v59 = vunpack.i.l.bf16 %v3208_v35 }
 0x2e1   :  { %3497 = vrot.lane.b32.xlu0 %v4455_v44, %s3857_s22  ;;  %3492 = vrot.lane.b32.xlu1 %v4455_v44, %s3859_s2 }
 0x2e3   :  { %v4480_v26 = vpop.permute.xlu0 %3217  ;;  %v4482_v57 = vpop.permute.xlu1 %3212 }
 0x2e4   :  { %5453 = vst [vmem:[#allocation22_spill] sm:$0xff] %v4480_v26  ;;  %5454 = vst [vmem:[#allocation23_spill] sm:$0xff] %v4482_v57 }
 0x2e5   :  { %3512 = vrot.lane.b32.xlu0 %v4487_v0, %s3854_s19  ;;  %3502 = vrot.lane.b32.xlu1 %v4487_v0, %s3853_s0  ;;  %s3862_s0 = smov 119  }
 0x2e7   :  { %v4493_v53 = vpop.permute.xlu0 %3227  ;;  %v4495_v56 = vpop.permute.xlu1 %3222 }
 0x2e8   :  { %5456 = vst [vmem:[#allocation24_spill] sm:$0xff] %v4493_v53  ;;  %5457 = vst [vmem:[#allocation25_spill] sm:$0xff] %v4495_v56  ;;  %v769_v56 = vsel %vm137_vm8, %v3209_v59, %v3210_v9 }
 0x2e9   :  { %3517 = vrot.lane.b32.xlu0 %v4358_v14, %s3861_s14  ;;  %3507 = vrot.lane.b32.xlu1 %v4138_v27, %s3859_s2 }
 0x2eb   :  { %v4501_v51 = vpop.permute.xlu0 %3237  ;;  %v3233_v45 = vpop.permute.xlu1 %3232 }
 0x2ec   :  { %5458 = vst [vmem:[#allocation26_spill] sm:$0xff] %v4501_v51  ;;  %v3235_v58 = vunpack.i.h.bf16 %v3233_v45  ;;  %v3234_v26 = vunpack.i.l.bf16 %v3233_v45 }
 0x2ed   :  { %3527 = vrot.lane.b32.xlu0 %v4396_v52, %s3860_s13  ;;  %3522 = vrot.lane.b32.xlu1 %v4396_v52, %s3861_s14 }
 0x2ee   :  { %v770_v53 = vsel %vm137_vm8, %v3234_v26, %v3235_v58 }
 0x2ef   :  { %v4509_v39 = vpop.permute.xlu0 %3252  ;;  %v4511_v57 = vpop.permute.xlu1 %3242  ;;  %v2733_v35 = vpack.c.bf16 %v770_v53, %v769_v56 }
 0x2f0   :  { %5459 = vst [vmem:[#allocation27_spill] sm:$0xff] %v4509_v39 }
 0x2f1   :  { %3537 = vrot.lane.b32.xlu0 %v4138_v27, %s3860_s13  ;;  %3532 = vrot.lane.b32.xlu1 %v4428_v62, %s3860_s13 }
 0x2f2   :  { %2734 = vmatprep.subr.bf16.mxu1 %v2733_v35 }
 0x2f3   :  { %2736 = vmatpush3.bf16.msra.mxu1 %v4128_v18  ;;  %v4518_v45 = vpop.permute.xlu0 %3257  ;;  %v4520_v51 = vpop.permute.xlu1 %3247 }
 0x2f4   :  { %5460 = vst [vmem:[#allocation28_spill] sm:$0xff] %v4518_v45  ;;  %5461 = vst [vmem:[#allocation29_spill] sm:$0xff] %v4520_v51 }
 0x2f5   :  { %3547 = vrot.lane.b32.xlu0 %v4167_v48, %s3859_s2  ;;  %3542 = vrot.lane.b32.xlu1 %v4167_v48, %s3860_s13 }
 0x2f7   :  { %v3263_v58 = vpop.permute.xlu0 %3262  ;;  %v4526_v26 = vpop.permute.xlu1 %3267 }
 0x2f8   :  { %v3265_v56 = vunpack.i.h.bf16 %v3263_v58  ;;  %v3264_v9 = vunpack.i.l.bf16 %v3263_v58 }
 0x2f9   :  { %3557 = vrot.lane.b32.xlu0 %v4428_v62, %s3861_s14  ;;  %3552 = vrot.lane.b32.xlu1 %v4191_v61, %s3859_s2 }
 0x2fb   :  { %v4532_v18 = vpop.permute.xlu0 %3272  ;;  %v4534_v27 = vpop.permute.xlu1 %3277 }
 0x2fc   :  { %5462 = vst [vmem:[#allocation30_spill] sm:$0xff] %v4534_v27 }
 0x2fd   :  { %3567 = vrot.lane.b32.xlu0 %v4455_v44, %s3860_s13  ;;  %3562 = vrot.lane.b32.xlu1 %v4455_v44, %s3861_s14 }
 0x2ff   :  { %v4540_v48 = vpop.permute.xlu0 %3282  ;;  %v4542_v53 = vpop.permute.xlu1 %3287 }
 0x300   :  { %5463 = vst [vmem:[#allocation31_spill] sm:$0xff] %v4540_v48  ;;  %5464 = vst [vmem:[#allocation32_spill] sm:$0xff] %v4542_v53  ;;  %v771_v48 = vsel %vm137_vm8, %v3264_v9, %v3265_v56  ;;  %v3611_v56 = vpack.i.bf16 %v4423_v10, %v4076_v33 }
 0x301   :  { %3572 = vrot.lane.b32.xlu0 %v4191_v61, %s3860_s13  ;;  %3577 = vrot.lane.b32.xlu1 %v4213_v3, %s3860_s13 }
 0x303   :  { %v4548_v59 = vpop.permute.xlu0 %3292  ;;  %v3298_v35 = vpop.permute.xlu1 %3297 }
 0x304   :  { %5465 = vst [vmem:[#allocation33_spill] sm:$0xff] %v4548_v59  ;;  %v3300_v45 = vunpack.i.h.bf16 %v3298_v35  ;;  %v3299_v39 = vunpack.i.l.bf16 %v3298_v35 }
 0x305   :  { %3582 = vrot.lane.b32.xlu0 %v4213_v3, %s3859_s2  ;;  %3587 = vrot.lane.b32.xlu1 %v4225_v4, %s3859_s2 }
 0x306   :  { %v772_v61 = vsel %vm137_vm8, %v3299_v39, %v3300_v45  ;;  %v3606_v39 = vpack.i.bf16 %v4423_v10, %v4072_v25 }
 0x307   :  { %v4556_v53 = vpop.permute.xlu0 %3302  ;;  %v4558_v27 = vpop.permute.xlu1 %3307  ;;  %v2737_v58 = vpack.c.bf16 %v772_v61, %v771_v48 }
 0x309   :  { %3602 = vrot.lane.b32.xlu0 %v4487_v0, %s3856_s21  ;;  %3592 = vrot.lane.b32.xlu1 %v4487_v0, %s3855_s20 }
 0x30a   :  { %2738 = vmatprep.subr.bf16.mxu1 %v2737_v58 }
 0x30b   :  { %2740 = vmatpush3.bf16.msra.mxu1 %v4149_v32  ;;  %v3313_v3 = vpop.permute.xlu0 %3312  ;;  %v4565_v35 = vpop.permute.xlu1 %3317 }
 0x30c   :  { %5466 = vst [vmem:[#allocation34_spill] sm:$0xff] %v4565_v35  ;;  %v3315_v9 = vunpack.i.h.bf16 %v3313_v3  ;;  %v3314_v61 = vunpack.i.l.bf16 %v3313_v3  ;;  %v3646_v3 = vpack.i.bf16 %v4423_v10, %v4084_v42 }
 0x30d   :  { %3607 = vrot.lane.b32.xlu0 %v3606_v39, %s3861_s14  ;;  %3597 = vrot.lane.b32.xlu1 %v3606_v39, %s3862_s0 }
 0x30f   :  { %v4571_v45 = vpop.permute.xlu0 %3322  ;;  %v4573_v48 = vpop.permute.xlu1 %3327 }
 0x310   :  { %5467 = vst [vmem:[#allocation35_spill] sm:$0xff] %v4571_v45  ;;  %5468 = vst [vmem:[#allocation36_spill] sm:$0xff] %v4573_v48 }
 0x311   :  { %3617 = vrot.lane.b32.xlu0 %v4225_v4, %s3860_s13  ;;  %3612 = vrot.lane.b32.xlu1 %v3611_v56, %s3861_s14 }
 0x313   :  { %v4580_v32 = vpop.permute.xlu0 %3332  ;;  %v4582_v25 = vpop.permute.xlu1 %3342 }
 0x314   :  { %5469 = vst [vmem:[#allocation37_spill] sm:$0xff] %v4580_v32  ;;  %v1283_v32 = vsel %vm1272_vm13, %v3314_v61, %v3315_v9 }
 0x315   :  { %3627 = vrot.lane.b32.xlu0 %v4242_v5, %s3859_s2  ;;  %3622 = vrot.lane.b32.xlu1 %v4242_v5, %s3860_s13 }
 0x317   :  { %v3338_v58 = vpop.permute.xlu0 %3337  ;;  %v3353_v39 = vpop.permute.xlu1 %3352 }
 0x318   :  { %v3355_v33 = vunpack.i.h.bf16 %v3353_v39  ;;  %v3354_v45 = vunpack.i.l.bf16 %v3353_v39  ;;  %v3339_v9 = vunpack.i.l.bf16 %v3338_v58 }
 0x319   :  { %3637 = vrot.lane.b32.xlu0 %v3611_v56, %s3862_s0  ;;  %3632 = vrot.lane.b32.xlu1 %v4258_v7, %s3859_s2  ;;  %v3651_v7 = vpack.i.bf16 %v4423_v10, %v4086_v43 }
 0x31a   :  { %v1284_v59 = vsel %vm1272_vm13, %v3354_v45, %v3355_v33  ;;  %v3340_v45 = vunpack.i.h.bf16 %v3338_v58 }
 0x31b   :  { %v4593_v48 = vpop.permute.xlu0 %3347  ;;  %v4595_v35 = vpop.permute.xlu1 %3362  ;;  %v2813_v51 = vpack.c.bf16 %v1284_v59, %v1283_v32 }
 0x31c   :  { %5470 = vst [vmem:[#allocation38_spill] sm:$0xff] %v4595_v35 }
 0x31d   :  { %3647 = vrot.lane.b32.xlu0 %v3646_v3, %s3861_s14  ;;  %3642 = vrot.lane.b32.xlu1 %v3646_v3, %s3862_s0 }
 0x31e   :  { %2814 = vmatprep.subr.bf16.mxu0 %v2813_v51  ;;  %v773_v51 = vsel %vm137_vm8, %v3339_v9, %v3340_v45  ;;  %v3686_v45 = vpack.i.bf16 %v4423_v10, %v4096_v54 }
 0x31f   :  { %v3358_v56 = vpop.permute.xlu0 %3357  ;;  %v4601_v39 = vpop.permute.xlu1 %3367 }
 0x320   :  { %5471 = vst [vmem:[#allocation39_spill] sm:$0xff] %v4601_v39  ;;  %v3360_v58 = vunpack.i.h.bf16 %v3358_v56 }
 0x321   :  { %3657 = vrot.lane.b32.xlu0 %v4225_v4, %s3862_s0  ;;  %3652 = vrot.lane.b32.xlu1 %v3651_v7, %s3861_s14 }
 0x323   :  { %v3373_v42 = vpop.permute.xlu0 %3372  ;;  %v3378_v59 = vpop.permute.xlu1 %3377 }
 0x324   :  { %v3380_v32 = vunpack.i.h.bf16 %v3378_v59  ;;  %v3379_v61 = vunpack.i.l.bf16 %v3378_v59  ;;  %v3359_v59 = vunpack.i.l.bf16 %v3358_v56 }
 0x325   :  { %3672 = vrot.lane.b32.xlu0 %v4487_v0, %s3859_s2  ;;  %3662 = vrot.lane.b32.xlu1 %v4487_v0, %s3857_s22 }
 0x326   :  { %v774_v43 = vsel %vm137_vm8, %v3379_v61, %v3380_v32  ;;  %v3374_v61 = vunpack.i.l.bf16 %v3373_v42 }
 0x327   :  { %v3383_v33 = vpop.permute.xlu0 %3382  ;;  %v4614_v4 = vpop.permute.xlu1 %3387  ;;  %v2741_v3 = vpack.c.bf16 %v774_v43, %v773_v51 }
 0x329   :  { %3677 = vrot.lane.b32.xlu0 %v3651_v7, %s3862_s0  ;;  %3667 = vrot.lane.b32.xlu1 %v4242_v5, %s3862_s0  ;;  %v1181_v7 = vsel %vm213_vm12, %v3359_v59, %v3360_v58  ;;  %v3375_v5 = vunpack.i.h.bf16 %v3373_v42  ;;  %v3384_v58 = vunpack.i.l.bf16 %v3383_v33  ;;  %v1623_v59 = vld [vmem:[#allocation7 + $0x38] sm:$0xff] }
 0x32a   :  { %2742 = vmatprep.subr.bf16.mxu1 %v2741_v3  ;;  %2016 = vmatprep.mubr.f32.mxu0 %v1623_v59 }
 0x32b   :  { %2744 = vmatpush3.bf16.msra.mxu1 %v4173_v49  ;;  %v4620_v39 = vpop.permute.xlu0 %3392  ;;  %v3398_v35 = vpop.permute.xlu1 %3397  ;;  %v4633_v54 = vsel %vm1375_vm14, %v3374_v61, %v3375_v5 }
 0x32c   :  { %5472 = vst [vmem:[#allocation40_spill] sm:$0xff] %v4620_v39  ;;  %v3400_v9 = vunpack.i.h.bf16 %v3398_v35  ;;  %v3399_v32 = vunpack.i.l.bf16 %v3398_v35  ;;  %5473 = vst [vmem:[#allocation41_spill] sm:$0xff] %v4633_v54  ;;  %v3385_v35 = vunpack.i.h.bf16 %v3383_v33 }
 0x32d   :  { %3687 = vrot.lane.b32.xlu0 %v3686_v45, %s3861_s14  ;;  %3682 = vrot.lane.b32.xlu1 %v3686_v45, %s3862_s0 }
 0x32e   :  { %v1182_v56 = vsel %vm213_vm12, %v3399_v32, %v3400_v9 }
 0x32f   :  { %v2815_v51 = vpack.c.bf16 %v1182_v56, %v1181_v7  ;;  %v3403_v49 = vpop.permute.xlu0 %3402  ;;  %v3408_v43 = vpop.permute.xlu1 %3407  ;;  %v3706_v7 = vpack.i.bf16 %v4423_v10, %v4121_v15  ;;  %v3696_v56 = vpack.i.bf16 %v4423_v10, %v4098_v55 }
 0x330   :  { %v3410_v3 = vunpack.i.h.bf16 %v3408_v43  ;;  %v3409_v39 = vunpack.i.l.bf16 %v3408_v43  ;;  %v3405_v55 = vunpack.i.h.bf16 %v3403_v49 }
 0x331   :  { %3702 = vrot.lane.b32.xlu0 %v4487_v0, %s3861_s14  ;;  %3692 = vrot.lane.b32.xlu1 %v4487_v0, %s3860_s13 }
 0x332   :  { %v4636_v42 = vsel %vm1375_vm14, %v3409_v39, %v3410_v3  ;;  %2816 = vmatpush3.bf16.msra.mxu0 %v2815_v51  ;;  %v4647_v39 = vsel %vm156_vm9, %v3384_v58, %v3385_v35  ;;  %v3404_v3 = vunpack.i.l.bf16 %v3403_v49  ;;  %v3726_v58 = vpack.i.bf16 %v4423_v10, %v4106_v1 }
 0x333   :  { %5474 = vst [vmem:[#allocation42_spill] sm:$0xff] %v4636_v42  ;;  %v3413_v9 = vpop.permute.xlu0 %3412  ;;  %v3418_v32 = vpop.permute.xlu1 %3417  ;;  %5475 = vst [vmem:[#allocation43_spill] sm:$0xff] %v4647_v39  ;;  %v3731_v51 = vpack.i.bf16 %v4423_v10, %v4108_v2  ;;  %v3055_v39 = vunpack.i.h.bf16 %v4329_v40 }
 0x334   :  { %v3420_v5 = vunpack.i.h.bf16 %v3418_v32  ;;  %v3419_v61 = vunpack.i.l.bf16 %v3418_v32 }
 0x335   :  { %3707 = vrot.lane.b32.xlu0 %v3706_v7, %s3862_s0  ;;  %3697 = vrot.lane.b32.xlu1 %v3696_v56, %s3861_s14 }
 0x336   :  { %v4650_v33 = vsel %vm156_vm9, %v3419_v61, %v3420_v5  ;;  %v3415_v5 = vunpack.i.h.bf16 %v3413_v9  ;;  %v3414_v61 = vunpack.i.l.bf16 %v3413_v9 }
 0x337   :  { %5476 = vst [vmem:[#allocation44_spill] sm:$0xff] %v4650_v33  ;;  %v4654_v15 = vpop.permute.xlu0 %3427  ;;  %v4656_v43 = vpop.permute.xlu1 %3422  ;;  %v3054_v33 = vunpack.i.l.bf16 %v4329_v40 }
 0x338   :  { %v775_v9 = vsel %vm137_vm8, %v3414_v61, %v3415_v5  ;;  %v3009_v5 = vunpack.i.l.bf16 %v4274_v11  ;;  %v1661_v61 = vld [vmem:[%s5398_s4 + $0x8] sm:$0xff] }
 0x339   :  { %3717 = vrot.lane.b32.xlu0 %v3696_v56, %s3862_s0  ;;  %3712 = vrot.lane.b32.xlu1 %v4279_v13, %s3862_s0  ;;  %v1285_v56 = vsel %vm1272_vm13, %v3404_v3, %v3405_v55 }
 0x33b   :  { %v3438_v59 = vpop.permute.xlu0 %3437  ;;  %v3433_v35 = vpop.permute.xlu1 %3432 }
 0x33c   :  { %v3435_v32 = vunpack.i.h.bf16 %v3433_v35  ;;  %v3434_v7 = vunpack.i.l.bf16 %v3433_v35  ;;  %v3440_v2 = vunpack.i.h.bf16 %v3438_v59 }
 0x33d   :  { %3727 = vrot.lane.b32.xlu0 %v3726_v58, %s3861_s14  ;;  %3722 = vrot.lane.b32.xlu1 %v3726_v58, %s3862_s0 }
 0x33e   :  { %v1286_v45 = vsel %vm1272_vm13, %v3434_v7, %v3435_v32  ;;  %v1628_v32 = vld [vmem:[#allocation7 + $0x60] sm:$0xff]  ;;  %v3010_v7 = vunpack.i.h.bf16 %v4274_v11  ;;  %v3025_v11 = vunpack.i.h.bf16 %v4287_v21 }
 0x33f   :  { %v4667_v13 = vpop.permute.xlu0 %3447  ;;  %v3443_v49 = vpop.permute.xlu1 %3442  ;;  %v2817_v54 = vpack.c.bf16 %v1286_v45, %v1285_v56  ;;  %v3015_v56 = vunpack.i.h.bf16 %v4289_v22 }
 0x340   :  { %v3445_v1 = vunpack.i.h.bf16 %v3443_v49  ;;  %v3444_v42 = vunpack.i.l.bf16 %v3443_v49 }
 0x341   :  { %3737 = vrot.lane.b32.xlu0 %v4321_v37, %s3862_s0  ;;  %3732 = vrot.lane.b32.xlu1 %v3731_v51, %s3861_s14  ;;  %v3439_v37 = vunpack.i.l.bf16 %v3438_v59 }
 0x342   :  { %2818 = vmatprep.subr.bf16.mxu0 %v2817_v54  ;;  %v776_v55 = vsel %vm137_vm8, %v3444_v42, %v3445_v1  ;;  %v1616_v42 = vld [vmem:[#allocation7] sm:$0xff] }
 0x343   :  { %v4676_v3 = vpop.permute.xlu0 %3457  ;;  %v4678_v35 = vpop.permute.xlu1 %3452  ;;  %v2745_v58 = vpack.c.bf16 %v776_v55, %v775_v9  ;;  %v1627_v9 = vld [vmem:[#allocation7 + $0x58] sm:$0xff]  ;;  %v3035_v55 = vunpack.i.h.bf16 %v4300_v24 }
 0x345   :  { %3747 = vrot.lane.b32.xlu0 %v4396_v52, %s3862_s0  ;;  %3742 = vrot.lane.b32.xlu1 %v4358_v14, %s3862_s0  ;;  %v1183_v14 = vsel %vm213_vm12, %v3439_v37, %v3440_v2  ;;  %v3449_v52 = vunpack.i.l.bf16 %v4667_v13  ;;  %v1639_v37 = vld [vmem:[#allocation7 + $0xb8] sm:$0xff] }
 0x346   :  { %2746 = vmatprep.subr.bf16.mxu1 %v2745_v58 }
 0x347   :  { %2748 = vmatpush3.bf16.msra.mxu1 %v4197_v63  ;;  %v4685_v10 = vpop.permute.xlu0 %3467  ;;  %v3463_v54 = vpop.permute.xlu1 %3462  ;;  %v3450_v63 = vunpack.i.h.bf16 %v4667_v13  ;;  %v3014_v13 = vunpack.i.l.bf16 %v4289_v22  ;;  %v3030_v22 = vunpack.i.h.bf16 %v4308_v31 }
 0x348   :  { %v3465_v45 = vunpack.i.h.bf16 %v3463_v54  ;;  %v3464_v51 = vunpack.i.l.bf16 %v3463_v54  ;;  %v3034_v54 = vunpack.i.l.bf16 %v4300_v24  ;;  %v1660_v24 = vld [vmem:[%s5398_s4] sm:$0xff]  ;;  %v3469_v40 = vunpack.i.l.bf16 %v4685_v10 }
 0x349   :  { %3757 = vrot.lane.b32.xlu0 %v4455_v44, %s3862_s0  ;;  %3752 = vrot.lane.b32.xlu1 %v4428_v62, %s3862_s0  ;;  %v3024_v44 = vunpack.i.l.bf16 %v4287_v21  ;;  %v3045_v21 = vunpack.i.h.bf16 %v4316_v34 }
 0x34a   :  { %v1184_v59 = vsel %vm213_vm12, %v3464_v51, %v3465_v45  ;;  %1762 = vmatmul.mubr.f32.vlgmr.msra.gmra.mrb[0].mxu1 %v1616_v42  ;;  %v3020_v42 = vunpack.i.h.bf16 %v4302_v28  ;;  %v3044_v45 = vunpack.i.l.bf16 %v4316_v34  ;;  %v3019_v51 = vunpack.i.l.bf16 %v4302_v28 }
 0x34b   :  { %v2819_v62 = vpack.c.bf16 %v1184_v59, %v1183_v14  ;;  %v4703_v49 = vpop.permute.xlu0 %3472  ;;  %v3478_v1 = vpop.permute.xlu1 %3477  ;;  %1766 = vmatprep.mubr.f32.mxu1 %v1628_v32  ;;  %v1662_v32 = vld [vmem:[%s5398_s4 + $0x10] sm:$0xff]  ;;  %v878_v34 = vsel %vm156_vm9, %v3449_v52, %v3450_v63  ;;  %v3050_v28 = vunpack.i.h.bf16 %v4314_v36  ;;  %v3049_v59 = vunpack.i.l.bf16 %v4314_v36 }
 0x34c   :  { %v3480_v58 = vunpack.i.h.bf16 %v3478_v1  ;;  %v3479_v2 = vunpack.i.l.bf16 %v3478_v1  ;;  %v1638_v1 = vld [vmem:[#allocation7 + $0xb0] sm:$0xff]  ;;  %v4733_v52 = vsel %vm156_vm9, %v3009_v5, %v3010_v7  ;;  %v3060_v36 = vunpack.i.h.bf16 %v4327_v38  ;;  %v1663_v7 = vld [vmem:[%s5398_s4 + $0x18] sm:$0xff] }
 0x34d   :  { %1671 = vperm.xlu0 %3000, %v1661_v61   ;;  %3762 = vrot.lane.b32.xlu1 %v4487_v0, %s3862_s0  ;;  %v3029_v0 = vunpack.i.l.bf16 %v4308_v31  ;;  %v1650_v63 = vld [vmem:[#allocation7 + $0x110] sm:$0xff]  ;;  %v4736_v31 = vsel %vm156_vm9, %v3044_v45, %v3045_v21  ;;  %v4749_v5 = vsel %vm175_vm10, %v3014_v13, %v3015_v56  ;;  %v4757_v45 = vsel %vm175_vm10, %v3049_v59, %v3050_v28 }
 0x34e   :  { %1767 = vmatmul.mubr.f32.gmra.mrb[2].mxu1 %v1627_v9  ;;  %2820 = vmatpush3.bf16.msra.mxu0 %v2819_v62  ;;  %v879_v14 = vsel %vm156_vm9, %v3479_v2, %v3480_v58  ;;  %v3059_v58 = vunpack.i.l.bf16 %v4327_v38  ;;  %v4741_v2 = vsel %vm194_vm11, %v3024_v44, %v3025_v11  ;;  %v4752_v38 = vsel %vm1272_vm13, %v3034_v54, %v3035_v55  ;;  %v1649_v44 = vld [vmem:[#allocation7 + $0x108] sm:$0xff] }
 0x34f   :  { %v4726_v61 = vpop.permute.xlu0 %3487  ;;  %v4728_v62 = vpop.permute.xlu1 %3482  ;;  %1771 = vmatprep.mubr.f32.mxu1 %v1639_v37  ;;  %v2749_v9 = vpack.c.bf16 %v879_v14, %v878_v34  ;;  %v3470_v37 = vunpack.i.h.bf16 %v4685_v10  ;;  %5477 = vst [vmem:[#allocation45_spill] sm:$0xff] %v4752_v38  ;;  %v4760_v10 = vsel %vm213_vm12, %v3019_v51, %v3020_v42  ;;  %v4766_v56 = vsel %vm194_vm11, %v3054_v33, %v3055_v39  ;;  %v5511_v38 = vld [vmem:[#allocation35_spill] sm:$0xff] }
 0x350   :  { %v2755_v54 = vpack.c.bf16 %v4736_v31, %v4733_v52  ;;  %v3070_v34 = vunpack.i.h.bf16 %v4335_v23  ;;  %v3065_v14 = vunpack.i.h.bf16 %v4337_v29  ;;  %v3064_v28 = vunpack.i.l.bf16 %v4337_v29 }
 0x351   :  { %1666 = vperm.xlu0 %3000, %v1660_v24   ;;  %1676 = vperm.xlu1 %2999, %v1662_v32   ;;  %v4763_v24 = vsel %vm1375_vm14, %v3029_v0, %v3030_v22  ;;  %v1619_v32 = vld [vmem:[#allocation7 + $0x18] sm:$0xff]  ;;  %v4774_v42 = vsel %vm213_vm12, %v3059_v58, %v3060_v36  ;;  %v3475_v51 = vunpack.i.h.bf16 %v4703_v49  ;;  %v3474_v39 = vunpack.i.l.bf16 %v4703_v49 }
 0x352   :  { %1772 = vmatmul.mubr.f32.gmra.mrb[4].mxu1 %v1638_v1  ;;  %2750 = vmatprep.subr.bf16.mxu1 %v2749_v9  ;;  %v1287_v33 = vsel %vm1272_vm13, %v3469_v40, %v3470_v37  ;;  %v3069_v0 = vunpack.i.l.bf16 %v4335_v23  ;;  %v3085_v59 = vunpack.i.h.bf16 %v4353_v12  ;;  %v3084_v1 = vunpack.i.l.bf16 %v4353_v12 }
 0x353   :  { %v4754_v21 = vpop.permute.xlu0 %3497  ;;  %v3493_v11 = vpop.permute.xlu1 %3492  ;;  %1776 = vmatprep.mubr.f32.mxu1 %v1650_v63  ;;  %v4784_v49 = vsel %vm1272_vm13, %v3064_v28, %v3065_v14  ;;  %v3080_v37 = vunpack.i.h.bf16 %v4343_v50  ;;  %v3079_v40 = vunpack.i.l.bf16 %v4343_v50  ;;  %v3115_v23 = vunpack.i.h.bf16 %v4383_v30 }
 0x354   :  { %v3495_v13 = vunpack.i.h.bf16 %v3493_v11  ;;  %v3494_v55 = vunpack.i.l.bf16 %v3493_v11  ;;  %5478 = vst [vmem:[#allocation46_spill] sm:$0xff] %v4784_v49  ;;  %v3114_v12 = vunpack.i.l.bf16 %v4383_v30  ;;  %v968_v50 = vsel %vm175_vm10, %v3084_v1, %v3085_v59 }
 0x355   :  { %1681 = vperm.xlu1 %2999, %v1663_v7   ;;  %v3145_v30 = vunpack.i.h.bf16 %v4412_v17  ;;  %v3119_v59 = vunpack.i.l.bf16 %v4381_v47  ;;  %v3094_v1 = vunpack.i.l.bf16 %v4351_v8 }
 0x356   :  { %1777 = vmatmul.mubr.f32.gmra.mrb[6].mxu1 %v1649_v44  ;;  %v1288_v22 = vsel %vm1272_vm13, %v3494_v55, %v3495_v13  ;;  %v777_v44 = vsel %vm137_vm8, %v3474_v39, %v3475_v51  ;;  %v3144_v51 = vunpack.i.l.bf16 %v4412_v17  ;;  %v867_v17 = vsel %vm156_vm9, %v3114_v12, %v3115_v23 }
 0x357   :  { %v3513_v29 = vpop.permute.xlu0 %3512  ;;  %v3503_v9 = vpop.permute.xlu1 %3502  ;;  %v2821_v63 = vpack.c.bf16 %v1288_v22, %v1287_v33  ;;  %1846 = vmatprep.mubr.f32.mxu1 %v1619_v32  ;;  %v3099_v23 = vunpack.i.l.bf16 %v4375_v41  ;;  %v3194_v12 = vunpack.i.l.bf16 %v4465_v46 }
 0x358   :  { %v3515_v36 = vunpack.i.h.bf16 %v3513_v29  ;;  %v3514_v58 = vunpack.i.l.bf16 %v3513_v29  ;;  %v3505_v7 = vunpack.i.h.bf16 %v3503_v9  ;;  %v3504_v11 = vunpack.i.l.bf16 %v3503_v9 }
 0x359   :  { %2822 = vmatprep.subr.bf16.mxu0 %v2821_v63  ;;  %v4806_v29 = vsel %vm1375_vm14, %v3069_v0, %v3070_v34  ;;  %v866_v9 = vsel %vm156_vm9, %v3079_v40, %v3080_v37  ;;  %v3095_v63 = vunpack.i.h.bf16 %v4351_v8  ;;  %v3104_v34 = vunpack.i.l.bf16 %v4367_v19 }
 0x35a   :  { %v778_v13 = vsel %vm137_vm8, %v3504_v11, %v3505_v7  ;;  %v880_v55 = vsel %vm156_vm9, %v3514_v58, %v3515_v36  ;;  %5479 = vst [vmem:[#allocation47_spill] sm:$0xff] %v4806_v29  ;;  %v3105_v36 = vunpack.i.h.bf16 %v4367_v19  ;;  %v2757_v58 = vpack.c.bf16 %v968_v50, %v4757_v45  ;;  %v5507_v29 = vld [vmem:[#allocation36_spill] sm:$0xff] }
 0x35b   :  { %v2751_v32 = vpack.c.bf16 %v778_v13, %v777_v44  ;;  %v4793_v33 = vpop.permute.xlu0 %3517  ;;  %v4795_v14 = vpop.permute.xlu1 %3507  ;;  %v2753_v28 = vpack.c.bf16 %v4749_v5, %v880_v55  ;;  %v3120_v5 = vunpack.i.h.bf16 %v4381_v47  ;;  %v3090_v0 = vunpack.i.h.bf16 %v4369_v20 }
 0x35c   :  { %v3165_v7 = vunpack.i.h.bf16 %v4436_v16  ;;  %v3164_v11 = vunpack.i.l.bf16 %v4436_v16  ;;  %v3089_v8 = vunpack.i.l.bf16 %v4369_v20  ;;  %v3100_v40 = vunpack.i.h.bf16 %v4375_v41 }
 0x35d   :  { %2752 = vmatpush3.bf16.msra.mxu1 %v2751_v32  ;;  %v970_v45 = vsel %vm175_vm10, %v3144_v51, %v3145_v30  ;;  %v3195_v19 = vunpack.i.h.bf16 %v4465_v46  ;;  %v2759_v16 = vpack.c.bf16 %v867_v17, %v866_v9  ;;  %v969_v44 = vsel %vm175_vm10, %v3119_v59, %v3120_v5  ;;  %v5481_v30 = vld [vmem:[#allocation19_spill] sm:$0xff] }
 0x35e   :  { %2754 = vmatprep.subr.bf16.mxu1 %v2753_v28  ;;  %v3140_v13 = vunpack.i.h.bf16 %v4402_v60  ;;  %v3139_v20 = vunpack.i.l.bf16 %v4402_v60  ;;  %v3170_v55 = vunpack.i.h.bf16 %v4434_v6  ;;  %v3169_v41 = vunpack.i.l.bf16 %v4434_v6  ;;  %v5480_v28 = vld [vmem:[#allocation23_spill] sm:$0xff] }
 0x35f   :  { %v4820_v37 = vpop.permute.xlu0 %3527  ;;  %v4822_v47 = vpop.permute.xlu1 %3522  ;;  %v869_v32 = vsel %vm156_vm9, %v3164_v11, %v3165_v7  ;;  %v3215_v46 = vunpack.i.h.bf16 %v5480_v28  ;;  %v3214_v50 = vunpack.i.l.bf16 %v5480_v28  ;;  %v3190_v51 = vunpack.i.h.bf16 %v5481_v30  ;;  %v5482_v11 = vld [vmem:[#allocation22_spill] sm:$0xff] }
 0x360   :  { %v3189_v60 = vunpack.i.l.bf16 %v5481_v30  ;;  %v3245_v9 = vunpack.i.h.bf16 %v4511_v57  ;;  %v3244_v6 = vunpack.i.l.bf16 %v4511_v57  ;;  %v4850_v5 = vsel %vm194_vm11, %v3094_v1, %v3095_v63 }
 0x361   :  { %2756 = vmatpush3.bf16.msra.mxu1 %v2755_v54  ;;  %v2761_v54 = vpack.c.bf16 %v970_v45, %v969_v44  ;;  %v4853_v59 = vsel %vm1272_vm13, %v3104_v34, %v3105_v36  ;;  %v972_v17 = vsel %vm175_vm10, %v3194_v12, %v3195_v19  ;;  %v868_v7 = vsel %vm156_vm9, %v3139_v20, %v3140_v13  ;;  %v5484_v20 = vld [vmem:[#allocation26_spill] sm:$0xff] }
 0x362   :  { %2758 = vmatprep.subr.bf16.mxu1 %v2757_v58  ;;  %v4857_v58 = vsel %vm213_vm12, %v3089_v8, %v3090_v0  ;;  %v3220_v45 = vunpack.i.h.bf16 %v5482_v11  ;;  %v3219_v44 = vunpack.i.l.bf16 %v5482_v11  ;;  %v971_v57 = vsel %vm175_vm10, %v3169_v41, %v3170_v55 }
 0x363   :  { %v4841_v52 = vpop.permute.xlu0 %3537  ;;  %v4843_v31 = vpop.permute.xlu1 %3532  ;;  %v871_v63 = vsel %vm156_vm9, %v3214_v50, %v3215_v46  ;;  %v3270_v1 = vunpack.i.h.bf16 %v4526_v26  ;;  %v3269_v36 = vunpack.i.l.bf16 %v4526_v26  ;;  %v2763_v0 = vpack.c.bf16 %v869_v32, %v868_v7  ;;  %v5485_v46 = vld [vmem:[#allocation14_spill] sm:$0xff] }
 0x364   :  { %v870_v8 = vsel %vm156_vm9, %v3189_v60, %v3190_v51  ;;  %v2765_v12 = vpack.c.bf16 %v972_v17, %v971_v57  ;;  %v4873_v13 = vsel %vm1375_vm14, %v3099_v23, %v3100_v40  ;;  %v3240_v55 = vunpack.i.h.bf16 %v5484_v20 }
 0x365   :  { %2760 = vmatpush3.bf16.msra.mxu1 %v2759_v16  ;;  %v974_v16 = vsel %vm175_vm10, %v3244_v6, %v3245_v9  ;;  %5483 = vst [vmem:[#allocation23_spill] sm:$0xff] %v4873_v13  ;;  %v3239_v41 = vunpack.i.l.bf16 %v5484_v20  ;;  %v3310_v28 = vunpack.i.h.bf16 %v4558_v27  ;;  %v3309_v26 = vunpack.i.l.bf16 %v4558_v27 }
 0x366   :  { %2762 = vmatprep.subr.bf16.mxu1 %v2761_v54  ;;  %v3125_v50 = vunpack.i.h.bf16 %v5485_v46  ;;  %v3124_v32 = vunpack.i.l.bf16 %v5485_v46  ;;  %v2767_v54 = vpack.c.bf16 %v871_v63, %v870_v8  ;;  %v973_v30 = vsel %vm175_vm10, %v3219_v44, %v3220_v45  ;;  %v5486_v45 = vld [vmem:[#allocation13_spill] sm:$0xff] }
 0x367   :  { %v4866_v34 = vpop.permute.xlu0 %3547  ;;  %v4868_v19 = vpop.permute.xlu1 %3542  ;;  %v873_v40 = vsel %vm156_vm9, %v3269_v36, %v3270_v1  ;;  %v3275_v23 = vunpack.i.h.bf16 %v4532_v18  ;;  %v3274_v51 = vunpack.i.l.bf16 %v4532_v18  ;;  %v2769_v27 = vpack.c.bf16 %v974_v16, %v973_v30 }
 0x368   :  { %v3345_v6 = vunpack.i.h.bf16 %v4582_v25  ;;  %v3344_v17 = vunpack.i.l.bf16 %v4582_v25  ;;  %v3390_v7 = vunpack.i.h.bf16 %v4614_v4  ;;  %v3389_v11 = vunpack.i.l.bf16 %v4614_v4 }
 0x369   :  { %2764 = vmatpush3.bf16.msra.mxu1 %v2763_v0  ;;  %v3130_v44 = vunpack.i.h.bf16 %v5486_v45  ;;  %v3129_v57 = vunpack.i.l.bf16 %v5486_v45  ;;  %v872_v63 = vsel %vm156_vm9, %v3239_v41, %v3240_v55  ;;  %v976_v18 = vsel %vm175_vm10, %v3309_v26, %v3310_v28  ;;  %v5487_v26 = vld [vmem:[#allocation16_spill] sm:$0xff]  ;;  %v5494_v55 = vld [vmem:[#allocation43_spill] sm:$0xff] }
 0x36a   :  { %2766 = vmatprep.subr.bf16.mxu1 %v2765_v12  ;;  %v3305_v1 = vunpack.i.h.bf16 %v4556_v53  ;;  %v3304_v36 = vunpack.i.l.bf16 %v4556_v53  ;;  %v3350_v0 = vunpack.i.h.bf16 %v4593_v48  ;;  %v3349_v25 = vunpack.i.l.bf16 %v4593_v48 }
 0x36b   :  { %v4885_v60 = vpop.permute.xlu0 %3557  ;;  %v4887_v9 = vpop.permute.xlu1 %3552  ;;  %v2771_v12 = vpack.c.bf16 %v873_v40, %v872_v63  ;;  %v975_v16 = vsel %vm175_vm10, %v3274_v51, %v3275_v23  ;;  %v4911_v53 = vsel %vm194_vm11, %v3124_v32, %v3125_v50  ;;  %v875_v41 = vsel %vm156_vm9, %v3344_v17, %v3345_v6  ;;  %v5488_v23 = vld [vmem:[#allocation15_spill] sm:$0xff]  ;;  %v5489_v6 = vld [vmem:[#allocation40_spill] sm:$0xff] }
 0x36c   :  { %v2773_v48 = vpack.c.bf16 %v976_v18, %v975_v16  ;;  %v978_v28 = vsel %vm175_vm10, %v3389_v11, %v3390_v7  ;;  %v3150_v46 = vunpack.i.h.bf16 %v5487_v26  ;;  %v3425_v30 = vunpack.i.h.bf16 %v4656_v43 }
 0x36d   :  { %2768 = vmatpush3.bf16.msra.mxu1 %v2767_v54  ;;  %v3149_v54 = vunpack.i.l.bf16 %v5487_v26  ;;  %v3424_v40 = vunpack.i.l.bf16 %v4656_v43  ;;  %v3155_v51 = vunpack.i.h.bf16 %v5488_v23  ;;  %v977_v50 = vsel %vm175_vm10, %v3349_v25, %v3350_v0  ;;  %v5491_v26 = vld [vmem:[#allocation18_spill] sm:$0xff] }
 0x36e   :  { %2770 = vmatprep.subr.bf16.mxu1 %v2769_v27  ;;  %v874_v27 = vsel %vm156_vm9, %v3304_v36, %v3305_v1  ;;  %v4923_v32 = vsel %vm213_vm12, %v3129_v57, %v3130_v44  ;;  %v3395_v17 = vunpack.i.h.bf16 %v5489_v6  ;;  %v3394_v7 = vunpack.i.l.bf16 %v5489_v6  ;;  %v5490_v57 = vld [vmem:[#allocation17_spill] sm:$0xff] }
 0x36f   :  { %v4901_v8 = vpop.permute.xlu0 %3567  ;;  %v4903_v4 = vpop.permute.xlu1 %3562  ;;  %v2775_v43 = vpack.c.bf16 %v875_v41, %v874_v27  ;;  %v2777_v63 = vpack.c.bf16 %v978_v28, %v977_v50  ;;  %v3455_v18 = vunpack.i.h.bf16 %v4678_v35  ;;  %v3454_v1 = vunpack.i.l.bf16 %v4678_v35 }
 0x370   :  { %v3485_v36 = vunpack.i.h.bf16 %v4728_v62  ;;  %v3484_v0 = vunpack.i.l.bf16 %v4728_v62  ;;  %v3154_v44 = vunpack.i.l.bf16 %v5488_v23  ;;  %v3180_v25 = vunpack.i.h.bf16 %v5490_v57 }
 0x371   :  { %2772 = vmatpush3.bf16.msra.mxu1 %v2771_v12  ;;  %v1081_v12 = vsel %vm194_vm11, %v3424_v40, %v3425_v30  ;;  %v4939_v16 = vsel %vm213_vm12, %v3149_v54, %v3150_v46  ;;  %v3430_v41 = vunpack.i.h.bf16 %v4654_v15  ;;  %v3460_v35 = vunpack.i.h.bf16 %v4676_v3 }
 0x372   :  { %2774 = vmatprep.subr.bf16.mxu1 %v2773_v48  ;;  %v3429_v48 = vunpack.i.l.bf16 %v4654_v15  ;;  %v3459_v28 = vunpack.i.l.bf16 %v4676_v3  ;;  %v3179_v62 = vunpack.i.l.bf16 %v5490_v57  ;;  %v3175_v23 = vunpack.i.h.bf16 %v5491_v26 }
 0x373   :  { %v4927_v11 = vpop.permute.xlu0 %3572  ;;  %v4929_v45 = vpop.permute.xlu1 %3577  ;;  %v3174_v27 = vunpack.i.l.bf16 %v5491_v26  ;;  %v1080_v46 = vsel %vm194_vm11, %v3394_v7, %v3395_v17  ;;  %v980_v54 = vsel %vm175_vm10, %v3454_v1, %v3455_v18  ;;  %v1083_v40 = vsel %vm194_vm11, %v3484_v0, %v3485_v36  ;;  %v5493_v26 = vld [vmem:[#allocation44_spill] sm:$0xff]  ;;  %v1618_v17 = vld [vmem:[#allocation7 + $0x10] sm:$0xff] }
 0x374   :  { %v2781_v15 = vpack.c.bf16 %v1081_v12, %v1080_v46  ;;  %v4958_v6 = vsel %vm194_vm11, %v3154_v44, %v3155_v51  ;;  %v5495_v39 = vpack.c.bf16 %v5493_v26, %v5494_v55  ;;  %v979_v18 = vsel %vm175_vm10, %v3429_v48, %v3430_v41  ;;  %v1630_v0 = vld [vmem:[#allocation7 + $0x70] sm:$0xff] }
 0x375   :  { %2776 = vmatpush3.bf16.msra.mxu1 %v2775_v43  ;;  %v5492_v43 = vld [vmem:[#allocation21_spill] sm:$0xff]  ;;  %v3490_v1 = vunpack.i.h.bf16 %v4726_v61  ;;  %v3489_v36 = vunpack.i.l.bf16 %v4726_v61  ;;  %v1082_v51 = vsel %vm194_vm11, %v3459_v28, %v3460_v35  ;;  %v4972_v44 = vsel %vm194_vm11, %v3174_v27, %v3175_v23  ;;  %v5496_v61 = vld [vmem:[#allocation20_spill] sm:$0xff] }
 0x376   :  { %2778 = vmatprep.subr.bf16.mxu1 %v2777_v63  ;;  %v3200_v63 = vunpack.i.h.bf16 %v5492_v43  ;;  %v3199_v57 = vunpack.i.l.bf16 %v5492_v43  ;;  %v2783_v12 = vpack.c.bf16 %v980_v54, %v979_v18  ;;  %v2785_v46 = vpack.c.bf16 %v1083_v40, %v1082_v51  ;;  %v5497_v28 = vld [vmem:[#allocation24_spill] sm:$0xff]  ;;  %v1629_v23 = vld [vmem:[#allocation7 + $0x68] sm:$0xff] }
 0x377   :  { %v4948_v50 = vpop.permute.xlu0 %3582  ;;  %v4950_v30 = vpop.permute.xlu1 %3587  ;;  %v4975_v43 = vsel %vm213_vm12, %v3179_v62, %v3180_v25  ;;  %v3204_v35 = vunpack.i.l.bf16 %v5496_v61  ;;  %v3230_v3 = vunpack.i.h.bf16 %v5497_v28  ;;  %v3229_v25 = vunpack.i.l.bf16 %v5497_v28  ;;  %v5498_v18 = vld [vmem:[#allocation25_spill] sm:$0xff]  ;;  %v5501_v28 = vld [vmem:[#allocation32_spill] sm:$0xff] }
 0x378   :  { %v4981_v27 = vsel %vm213_vm12, %v3199_v57, %v3200_v63  ;;  %v981_v62 = vsel %vm175_vm10, %v3489_v36, %v3490_v1  ;;  %v3225_v51 = vunpack.i.h.bf16 %v5498_v18  ;;  %v5499_v57 = vld [vmem:[#allocation29_spill] sm:$0xff]  ;;  %v3330_v13 = vunpack.i.h.bf16 %v5507_v29 }
 0x379   :  { %2780 = vmatpush3.bf16.msra.mxu1 %v5495_v39  ;;  %v3249_v1 = vunpack.i.l.bf16 %v5499_v57  ;;  %vm2309_vm8 = vcmask 173056   ;;  %vm2389_vm9 = vcmask 11264  }
 0x37a   :  { %2782 = vmatprep.subr.bf16.mxu1 %v2781_v15  ;;  %v3205_v15 = vunpack.i.h.bf16 %v5496_v61  ;;  %v3250_v61 = vunpack.i.h.bf16 %v5499_v57 }
 0x37b   :  { %v3603_v55 = vpop.permute.xlu0 %3602  ;;  %v3593_v39 = vpop.permute.xlu1 %3592 }
 0x37c   :  { %v3605_v26 = vunpack.i.h.bf16 %v3603_v55  ;;  %v3604_v41 = vunpack.i.l.bf16 %v3603_v55  ;;  %v3595_v48 = vunpack.i.h.bf16 %v3593_v39  ;;  %v3594_v7 = vunpack.i.l.bf16 %v3593_v39  ;;  %1847 = vmatmul.mubr.f32.vlgmr.msra.gmra.mrb[8].mxu1 %v1618_v17  ;;  %v1641_v17 = vld [vmem:[#allocation7 + $0xc8] sm:$0xff] }
 0x37d   :  { %2784 = vmatpush3.bf16.msra.mxu1 %v2783_v12  ;;  %1851 = vmatprep.mubr.f32.mxu1 %v1630_v0  ;;  %v3224_v55 = vunpack.i.l.bf16 %v5498_v18 }
 0x37e   :  { %v982_v54 = vsel %vm175_vm10, %v3594_v7, %v3595_v48  ;;  %2786 = vmatprep.subr.bf16.mxu1 %v2785_v46  ;;  %v1084_v40 = vsel %vm194_vm11, %v3604_v41, %v3605_v26  ;;  %v5500_v7 = vld [vmem:[#allocation30_spill] sm:$0xff]  ;;  %v4999_v26 = vsel %vm194_vm11, %v3204_v35, %v3205_v15  ;;  %v1640_v41 = vld [vmem:[#allocation7 + $0xc0] sm:$0xff]  ;;  %v5019_v48 = vsel %vm213_vm12, %v3229_v25, %v3230_v3 }
 0x37f   :  { %v2787_v12 = vpack.c.bf16 %v982_v54, %v981_v62  ;;  %v4989_v0 = vpop.permute.xlu0 %3607  ;;  %v4991_v39 = vpop.permute.xlu1 %3597  ;;  %v2789_v63 = vpack.c.bf16 %v4760_v10, %v1084_v40  ;;  %v3280_v36 = vunpack.i.h.bf16 %v5500_v7  ;;  %v3279_v46 = vunpack.i.l.bf16 %v5500_v7  ;;  %v5502_v40 = vld [vmem:[#allocation34_spill] sm:$0xff]  ;;  %v1652_v15 = vld [vmem:[#allocation7 + $0x120] sm:$0xff] }
 0x380   :  { %1852 = vmatmul.mubr.f32.gmra.mrb[10].mxu1 %v1629_v23  ;;  %v3290_v62 = vunpack.i.h.bf16 %v5501_v28  ;;  %v3289_v54 = vunpack.i.l.bf16 %v5501_v28  ;;  %v3320_v18 = vunpack.i.h.bf16 %v5502_v40  ;;  %v3319_v23 = vunpack.i.l.bf16 %v5502_v40  ;;  %v5505_v28 = vld [vmem:[#allocation28_spill] sm:$0xff] }
 0x381   :  { %2788 = vmatpush3.bf16.msra.mxu1 %v2787_v12  ;;  %1856 = vmatprep.mubr.f32.mxu1 %v1641_v17  ;;  %v5010_v35 = vsel %vm194_vm11, %v3224_v55, %v3225_v51  ;;  %v5503_v17 = vld [vmem:[#allocation27_spill] sm:$0xff]  ;;  %v3260_v20 = vunpack.i.h.bf16 %v5505_v28  ;;  %v3259_v40 = vunpack.i.l.bf16 %v5505_v28  ;;  %v5027_v51 = vsel %vm213_vm12, %v3249_v1, %v3250_v61 }
 0x382   :  { %2790 = vmatprep.subr.bf16.mxu1 %v2789_v63  ;;  %v3255_v12 = vunpack.i.h.bf16 %v5503_v17  ;;  %v3254_v57 = vunpack.i.l.bf16 %v5503_v17  ;;  %v5024_v63 = vsel %vm194_vm11, %v3279_v46, %v3280_v36  ;;  %v5506_v55 = vld [vmem:[#allocation31_spill] sm:$0xff]  ;;  %v3329_v3 = vunpack.i.l.bf16 %v5507_v29  ;;  %v5509_v36 = vld [vmem:[#allocation33_spill] sm:$0xff] }
 0x383   :  { %v5014_v7 = vpop.permute.xlu0 %3617  ;;  %v5016_v10 = vpop.permute.xlu1 %3612  ;;  %v3285_v17 = vunpack.i.h.bf16 %v5506_v55  ;;  %v3284_v22 = vunpack.i.l.bf16 %v5506_v55  ;;  %v5508_v25 = vpack.c.bf16 %v4766_v56, %v4741_v2  ;;  %v1651_v28 = vld [vmem:[#allocation7 + $0x118] sm:$0xff]  ;;  %v3295_v46 = vunpack.i.h.bf16 %v5509_v36  ;;  %v1621_v29 = vld [vmem:[#allocation7 + $0x28] sm:$0xff] }
 0x384   :  { %5504 = vst [vmem:[#allocation19_spill] sm:$0xff] %v5014_v7  ;;  %1857 = vmatmul.mubr.f32.gmra.mrb[12].mxu1 %v1640_v41  ;;  %v3294_v41 = vunpack.i.l.bf16 %v5509_v36  ;;  %v5510_v61 = vpack.c.bf16 %v4857_v58, %v4774_v42  ;;  %v5042_v1 = vsel %vm213_vm12, %v3319_v23, %v3320_v18  ;;  %v5045_v55 = vsel %vm1478_vm15, %v3289_v54, %v3290_v62  ;;  %v5514_v42 = vld [vmem:[#allocation38_spill] sm:$0xff]  ;;  %v5515_v23 = vld [vmem:[#allocation39_spill] sm:$0xff] }
 0x385   :  { %2792 = vmatpush3.bf16.msra.mxu1 %v5508_v25  ;;  %1861 = vmatprep.mubr.f32.mxu1 %v1652_v15  ;;  %v3325_v2 = vunpack.i.h.bf16 %v5511_v38  ;;  %v3324_v56 = vunpack.i.l.bf16 %v5511_v38  ;;  %v5512_v15 = vld [vmem:[#allocation37_spill] sm:$0xff]  ;;  %v3365_v58 = vunpack.i.h.bf16 %v5514_v42  ;;  %v3364_v18 = vunpack.i.l.bf16 %v5514_v42 }
 0x386   :  { %2794 = vmatprep.subr.bf16.mxu1 %v5510_v61  ;;  %v3335_v25 = vunpack.i.h.bf16 %v5512_v15  ;;  %v3334_v49 = vunpack.i.l.bf16 %v5512_v15  ;;  %v3370_v62 = vunpack.i.h.bf16 %v5515_v23  ;;  %v3369_v54 = vunpack.i.l.bf16 %v5515_v23 }
 0x387   :  { %v5051_v36 = vpop.permute.xlu0 %3627  ;;  %v5053_v7 = vpop.permute.xlu1 %3622  ;;  %v5060_v61 = vsel %vm194_vm11, %v3254_v57, %v3255_v12  ;;  %v5063_v38 = vsel %vm1375_vm14, %v3329_v3, %v3330_v13  ;;  %v5516_v15 = vpack.c.bf16 %v4911_v53, %v4850_v5  ;;  %v5517_v42 = vpack.c.bf16 %v4939_v16, %v4923_v32 }
 0x388   :  { %5513 = vst [vmem:[#allocation22_spill] sm:$0xff] %v5051_v36  ;;  %1862 = vmatmul.mubr.f32.gmra.mrb[14].mxu1 %v1651_v28  ;;  %v2803_v36 = vpack.c.bf16 %v5010_v35, %v4999_v26  ;;  %v2805_v28 = vpack.c.bf16 %v5027_v51, %v5019_v48  ;;  %v2807_v12 = vpack.c.bf16 %v5024_v63, %v5060_v61  ;;  %v3510_v63 = vunpack.i.h.bf16 %v4795_v14 }
 0x389   :  { %2796 = vmatpush3.bf16.msra.mxu1 %v5516_v15  ;;  %1931 = vmatprep.mubr.f32.mxu1 %v1621_v29  ;;  %v1179_v13 = vsel %vm213_vm12, %v3284_v22, %v3285_v17  ;;  %v5079_v57 = vsel %vm1478_vm15, %v3259_v40, %v3260_v20  ;;  %v5082_v5 = vsel %vm1375_vm14, %v3294_v41, %v3295_v46  ;;  %v3509_v51 = vunpack.i.l.bf16 %v4795_v14 }
 0x38a   :  { %2798 = vmatprep.subr.bf16.mxu1 %v5517_v42  ;;  %v5085_v53 = vsel %vm194_vm11, %v3324_v56, %v3325_v2  ;;  %v2809_v16 = vpack.c.bf16 %v5042_v1, %v1179_v13  ;;  %v2845_v48 = vpack.c.bf16 %v5045_v55, %v5079_v57  ;;  %v5095_v22 = vsel %vm194_vm11, %v3364_v18, %v3365_v58  ;;  %v1632_v55 = vld [vmem:[#allocation7 + $0x80] sm:$0xff] }
 0x38b   :  { %v5087_v26 = vpop.permute.xlu0 %3637  ;;  %v5089_v32 = vpop.permute.xlu1 %3632  ;;  %v2847_v20 = vpack.c.bf16 %v5063_v38, %v5082_v5  ;;  %v5100_v35 = vsel %vm1478_vm15, %v3334_v49, %v3335_v25  ;;  %v5103_v40 = vsel %vm1478_vm15, %v3369_v54, %v3370_v62  ;;  %v3525_v17 = vunpack.i.h.bf16 %v4822_v47 }
 0x38c   :  { %v3524_v3 = vunpack.i.l.bf16 %v4822_v47  ;;  %v5518_v46 = vpack.c.bf16 %v4972_v44, %v4958_v6  ;;  %v3535_v41 = vunpack.i.h.bf16 %v4843_v31  ;;  %v3534_v49 = vunpack.i.l.bf16 %v4843_v31 }
 0x38d   :  { %v3545_v1 = vunpack.i.h.bf16 %v4868_v19  ;;  %v3544_v29 = vunpack.i.l.bf16 %v4868_v19  ;;  %v5519_v2 = vpack.c.bf16 %v4981_v27, %v4975_v43  ;;  %v3500_v14 = vunpack.i.h.bf16 %v4754_v21 }
 0x38e   :  { %2800 = vmatpush3.bf16.msra.mxu1 %v5518_v46  ;;  %v3499_v47 = vunpack.i.l.bf16 %v4754_v21  ;;  %v3520_v56 = vunpack.i.h.bf16 %v4793_v33  ;;  %v3519_v6 = vunpack.i.l.bf16 %v4793_v33  ;;  %v3530_v31 = vunpack.i.h.bf16 %v4820_v37 }
 0x38f   :  { %2802 = vmatprep.subr.bf16.mxu1 %v5519_v2  ;;  %v5123_v44 = vpop.permute.xlu0 %3647  ;;  %v5125_v25 = vpop.permute.xlu1 %3642  ;;  %v3529_v19 = vunpack.i.l.bf16 %v4820_v37  ;;  %v3540_v58 = vunpack.i.h.bf16 %v4841_v52  ;;  %v3539_v43 = vunpack.i.l.bf16 %v4841_v52  ;;  %v5132_v27 = vsel %vm1272_vm13, %v3509_v51, %v3510_v63 }
 0x390   :  { %v3550_v21 = vunpack.i.h.bf16 %v4866_v34  ;;  %v3549_v18 = vunpack.i.l.bf16 %v4866_v34  ;;  %v5137_v33 = vsel %vm1478_vm15, %v3524_v3, %v3525_v17  ;;  %v5140_v23 = vsel %vm1375_vm14, %v3534_v49, %v3535_v41 }
 0x391   :  { %v3555_v37 = vunpack.i.h.bf16 %v4887_v9  ;;  %v3554_v62 = vunpack.i.l.bf16 %v4887_v9  ;;  %v5145_v52 = vsel %vm1375_vm14, %v3544_v29, %v3545_v1  ;;  %v1185_v54 = vsel %vm213_vm12, %v3499_v47, %v3500_v14 }
 0x392   :  { %2804 = vmatpush3.bf16.msra.mxu1 %v2803_v36  ;;  %v2811_v36 = vpack.c.bf16 %v5095_v22, %v5085_v53  ;;  %v2849_v15 = vpack.c.bf16 %v5103_v40, %v5100_v35  ;;  %v5157_v42 = vsel %vm1478_vm15, %v3519_v6, %v3520_v56  ;;  %v2831_v9 = vpack.c.bf16 %v5132_v27, %v4853_v59 }
 0x393   :  { %2806 = vmatprep.subr.bf16.mxu1 %v2805_v28  ;;  %v5148_v61 = vpop.permute.xlu0 %3657  ;;  %v5150_v34 = vpop.permute.xlu1 %3652  ;;  %v5162_v28 = vsel %vm1375_vm14, %v3529_v19, %v3530_v31  ;;  %v2853_v13 = vpack.c.bf16 %v5137_v33, %v5157_v42  ;;  %v5167_v63 = vsel %vm1375_vm14, %v3539_v43, %v3540_v58  ;;  %v5172_v22 = vsel %vm1272_vm13, %v3549_v18, %v3550_v21 }
 0x394   :  { %v2855_v53 = vpack.c.bf16 %v5140_v23, %v5162_v28  ;;  %v3560_v35 = vunpack.i.h.bf16 %v4885_v60  ;;  %v2833_v40 = vpack.c.bf16 %v5145_v52, %v5167_v63  ;;  %v3559_v51 = vunpack.i.l.bf16 %v4885_v60 }
 0x395   :  { %v5179_v17 = vsel %vm1272_vm13, %v3554_v62, %v3555_v37  ;;  %v3565_v3 = vunpack.i.h.bf16 %v4903_v4  ;;  %v3564_v46 = vunpack.i.l.bf16 %v4903_v4  ;;  %v3575_v41 = vunpack.i.h.bf16 %v4927_v11 }
 0x396   :  { %2808 = vmatpush3.bf16.msra.mxu1 %v2807_v12  ;;  %v3574_v49 = vunpack.i.l.bf16 %v4927_v11  ;;  %v3580_v1 = vunpack.i.h.bf16 %v4929_v45  ;;  %v3579_v12 = vunpack.i.l.bf16 %v4929_v45  ;;  %v3585_v6 = vunpack.i.h.bf16 %v4948_v50  ;;  %v1620_v11 = vld [vmem:[#allocation7 + $0x20] sm:$0xff] }
 0x397   :  { %2810 = vmatprep.subr.bf16.mxu1 %v2809_v16  ;;  %v3673_v29 = vpop.permute.xlu0 %3672  ;;  %v3663_v2 = vpop.permute.xlu1 %3662  ;;  %v3584_v31 = vunpack.i.l.bf16 %v4948_v50  ;;  %v3590_v4 = vunpack.i.h.bf16 %v4950_v30  ;;  %v3589_v16 = vunpack.i.l.bf16 %v4950_v30  ;;  %v3570_v19 = vunpack.i.h.bf16 %v4901_v8 }
 0x398   :  { %v3675_v14 = vunpack.i.h.bf16 %v3673_v29  ;;  %v3674_v60 = vunpack.i.l.bf16 %v3673_v29  ;;  %v3665_v47 = vunpack.i.h.bf16 %v3663_v2  ;;  %v3664_v56 = vunpack.i.l.bf16 %v3663_v2 }
 0x399   :  { %v3569_v45 = vunpack.i.l.bf16 %v4901_v8  ;;  %v3615_v50 = vunpack.i.h.bf16 %v5016_v10  ;;  %v3614_v21 = vunpack.i.l.bf16 %v5016_v10  ;;  %v3610_v8 = vunpack.i.h.bf16 %v4989_v0 }
 0x39a   :  { %2812 = vmatpush3.bf16.msra.mxu1 %v2811_v36  ;;  %v1186_v58 = vsel %vm213_vm12, %v3664_v56, %v3665_v47  ;;  %v1289_v43 = vsel %vm1272_vm13, %v3674_v60, %v3675_v14  ;;  %v3609_v36 = vunpack.i.l.bf16 %v4989_v0  ;;  %v5208_v57 = vsel %vm1478_vm15, %v3564_v46, %v3565_v3  ;;  %v1643_v14 = vld [vmem:[#allocation7 + $0xd8] sm:$0xff] }
 0x39b   :  { %2846 = vmatprep.subr.bf16.mxu1 %v2845_v48  ;;  %v2823_v18 = vpack.c.bf16 %v1186_v58, %v1185_v54  ;;  %v5200_v30 = vpop.permute.xlu0 %3677  ;;  %v5202_v37 = vpop.permute.xlu1 %3667  ;;  %v2825_v62 = vpack.c.bf16 %v4763_v24, %v1289_v43  ;;  %v5211_v48 = vsel %vm1375_vm14, %v3574_v49, %v3575_v41  ;;  %v5214_v10 = vsel %vm1272_vm13, %v3584_v31, %v3585_v6  ;;  %v1631_v24 = vld [vmem:[#allocation7 + $0x78] sm:$0xff]  ;;  %v1642_v58 = vld [vmem:[#allocation7 + $0xd0] sm:$0xff] }
 0x39c   :  { %v5217_v54 = vsel %vm1272_vm13, %v3589_v16, %v3590_v4  ;;  %v5223_v0 = vsel %vm1375_vm14, %v3579_v12, %v3580_v1  ;;  %v3600_v3 = vunpack.i.h.bf16 %v4991_v39  ;;  %v3599_v46 = vunpack.i.l.bf16 %v4991_v39  ;;  %v5520_v41 = vld [vmem:[#allocation19_spill] sm:$0xff]  ;;  %v5522_v4 = vld [vmem:[#allocation45_spill] sm:$0xff] }
 0x39d   :  { %1932 = vmatmul.mubr.f32.vlgmr.msra.gmra.mrb[16].mxu1 %v1620_v11  ;;  %2824 = vmatpush3.bf16.msra.mxu0 %v2823_v18  ;;  %v3620_v49 = vunpack.i.h.bf16 %v5520_v41  ;;  %v3619_v29 = vunpack.i.l.bf16 %v5520_v41  ;;  %v2835_v2 = vpack.c.bf16 %v5179_v17, %v5172_v22  ;;  %v5232_v38 = vsel %vm1375_vm14, %v3569_v45, %v3570_v19  ;;  %v5524_v11 = vld [vmem:[#allocation42_spill] sm:$0xff]  ;;  %v5525_v19 = vld [vmem:[#allocation41_spill] sm:$0xff] }
 0x39e   :  { %2848 = vmatpush3.bf16.msra.mxu1 %v2847_v20  ;;  %2826 = vmatprep.subr.bf16.mxu0 %v2825_v62  ;;  %v5235_v5 = vsel %vm1478_vm15, %v3614_v21, %v3615_v50  ;;  %v1493_v39 = vsel %vm1478_vm15, %v3559_v51, %v3560_v35  ;;  %v2839_v12 = vpack.c.bf16 %v5217_v54, %v5214_v10  ;;  %v3625_v56 = vunpack.i.h.bf16 %v5053_v7  ;;  %v5521_v51 = vld [vmem:[#allocation46_spill] sm:$0xff]  ;;  %v5527_v50 = vld [vmem:[#allocation23_spill] sm:$0xff] }
 0x39f   :  { %2850 = vmatprep.subr.bf16.mxu1 %v2849_v15  ;;  %v5237_v20 = vpop.permute.xlu0 %3687  ;;  %v5239_v1 = vpop.permute.xlu1 %3682  ;;  %1936 = vmatprep.mubr.f32.mxu1 %v1632_v55  ;;  %v5245_v15 = vsel %vm1478_vm15, %v3609_v36, %v3610_v8  ;;  %v2857_v60 = vpack.c.bf16 %v5208_v57, %v1493_v39  ;;  %v2837_v47 = vpack.c.bf16 %v5223_v0, %v5211_v48  ;;  %v3624_v6 = vunpack.i.l.bf16 %v5053_v7  ;;  %v5528_v21 = vld [vmem:[#allocation47_spill] sm:$0xff]  ;;  %v5530_v62 = vld [vmem:[#allocation22_spill] sm:$0xff] }
 0x3a0   :  { %v3635_v31 = vunpack.i.h.bf16 %v5089_v32  ;;  %v3634_v35 = vunpack.i.l.bf16 %v5089_v32  ;;  %v5523_v16 = vpack.c.bf16 %v5521_v51, %v5522_v4  ;;  %v5526_v45 = vpack.c.bf16 %v5524_v11, %v5525_v19 }
 0x3a1   :  { %1937 = vmatmul.mubr.f32.gmra.mrb[18].mxu1 %v1631_v24  ;;  %v2863_v43 = vpack.c.bf16 %v5235_v5, %v5245_v15  ;;  %v5529_v18 = vpack.c.bf16 %v5527_v50, %v5528_v21  ;;  %v1582_v7 = vsel %vm1581_vm0, %v3599_v46, %v3600_v3  ;;  %v5270_v32 = vsel %vm1375_vm14, %v3619_v29, %v3620_v49 }
 0x3a2   :  { %2828 = vmatpush3.bf16.msra.mxu0 %v5523_v16  ;;  %2852 = vmatpush3.bf16.msra.mxu1 %v5526_v45  ;;  %v3630_v8 = vunpack.i.h.bf16 %v5530_v62  ;;  %v3629_v36 = vunpack.i.l.bf16 %v5530_v62  ;;  %v3645_v55 = vunpack.i.h.bf16 %v5125_v25  ;;  %v3644_v57 = vunpack.i.l.bf16 %v5125_v25  ;;  %v1653_v25 = vld [vmem:[#allocation7 + $0x128] sm:$0xff] }
 0x3a3   :  { %2830 = vmatprep.subr.bf16.mxu0 %v5529_v18  ;;  %2854 = vmatprep.subr.bf16.mxu1 %v2853_v13  ;;  %v3703_v48 = vpop.permute.xlu0 %3702  ;;  %v3693_v24 = vpop.permute.xlu1 %3692  ;;  %v1654_v13 = vld [vmem:[#allocation7 + $0x130] sm:$0xff]  ;;  %v3640_v3 = vunpack.i.h.bf16 %v5087_v26  ;;  %v3639_v46 = vunpack.i.l.bf16 %v5087_v26  ;;  %v5279_v49 = vsel %vm1272_vm13, %v3634_v35, %v3635_v31  ;;  %v1384_v29 = vsel %vm1375_vm14, %v3624_v6, %v3625_v56 }
 0x3a4   :  { %1941 = vmatprep.mubr.f32.mxu1 %v1643_v14  ;;  %v3705_v0 = vunpack.i.h.bf16 %v3703_v48  ;;  %v3704_v41 = vunpack.i.l.bf16 %v3703_v48  ;;  %v3695_v33 = vunpack.i.h.bf16 %v3693_v24  ;;  %v3694_v42 = vunpack.i.l.bf16 %v3693_v24  ;;  %v1622_v48 = vld [vmem:[#allocation7 + $0x30] sm:$0xff] }
 0x3a5   :  { %1942 = vmatmul.mubr.f32.gmra.mrb[20].mxu1 %v1642_v58  ;;  %v3650_v39 = vunpack.i.h.bf16 %v5123_v44  ;;  %v3649_v14 = vunpack.i.l.bf16 %v5123_v44  ;;  %v3655_v27 = vunpack.i.h.bf16 %v5150_v34  ;;  %v3654_v23 = vunpack.i.l.bf16 %v5150_v34 }
 0x3a6   :  { %2832 = vmatpush3.bf16.msra.mxu0 %v2831_v9  ;;  %2856 = vmatpush3.bf16.msra.mxu1 %v2855_v53  ;;  %v1392_v26 = vsel %vm1375_vm14, %v3694_v42, %v3695_v33  ;;  %v1495_v59 = vsel %vm1478_vm15, %v3704_v41, %v3705_v0  ;;  %v1281_v56 = vsel %vm1272_vm13, %v3629_v36, %v3630_v8  ;;  %v3670_v6 = vunpack.i.h.bf16 %v5202_v37 }
 0x3a7   :  { %2834 = vmatprep.subr.bf16.mxu0 %v2833_v40  ;;  %2858 = vmatprep.subr.bf16.mxu1 %v2857_v60  ;;  %v2859_v9 = vpack.c.bf16 %v1392_v26, %v5232_v38  ;;  %v5298_v28 = vpop.permute.xlu0 %3707  ;;  %v3698_v53 = vpop.permute.xlu1 %3697  ;;  %v2861_v44 = vpack.c.bf16 %v1582_v7, %v1495_v59  ;;  %v3669_v52 = vunpack.i.l.bf16 %v5202_v37  ;;  %v1584_v63 = vsel %vm1581_vm0, %v3644_v57, %v3645_v55  ;;  %v1625_v40 = vld [vmem:[#allocation7 + $0x48] sm:$0xff]  ;;  %v1634_v26 = vld [vmem:[#allocation7 + $0x90] sm:$0xff] }
 0x3a8   :  { %1946 = vmatprep.mubr.f32.mxu1 %v1654_v13  ;;  %v3685_v60 = vunpack.i.h.bf16 %v5239_v1  ;;  %v3684_v34 = vunpack.i.l.bf16 %v5239_v1  ;;  %v2841_v38 = vpack.c.bf16 %v1384_v29, %v5270_v32  ;;  %v1583_v31 = vsel %vm1581_vm0, %v3639_v46, %v3640_v3  ;;  %v1633_v59 = vld [vmem:[#allocation7 + $0x88] sm:$0xff] }
 0x3a9   :  { %1947 = vmatmul.mubr.f32.gmra.mrb[22].mxu1 %v1653_v25  ;;  %v2843_v35 = vpack.c.bf16 %v5279_v49, %v1281_v56  ;;  %v1481_v37 = vsel %vm1478_vm15, %v3649_v14, %v3650_v39  ;;  %v3660_v51 = vunpack.i.h.bf16 %v5148_v61  ;;  %v3659_v4 = vunpack.i.l.bf16 %v5148_v61 }
 0x3aa   :  { %2836 = vmatpush3.bf16.msra.mxu0 %v2835_v2  ;;  %2860 = vmatpush3.bf16.msra.mxu1 %v2859_v9  ;;  %v1482_v1 = vsel %vm1478_vm15, %v3654_v23, %v3655_v27  ;;  %v3680_v22 = vunpack.i.h.bf16 %v5200_v30  ;;  %v3679_v17 = vunpack.i.l.bf16 %v5200_v30  ;;  %v2865_v11 = vpack.c.bf16 %v1584_v63, %v1583_v31 }
 0x3ab   :  { %2838 = vmatprep.subr.bf16.mxu0 %v2837_v47  ;;  %2862 = vmatprep.subr.bf16.mxu1 %v2861_v44  ;;  %v3718_v2 = vpop.permute.xlu0 %3717  ;;  %v3713_v16 = vpop.permute.xlu1 %3712  ;;  %v3690_v19 = vunpack.i.h.bf16 %v5237_v20  ;;  %v3700_v45 = vunpack.i.h.bf16 %v3698_v53  ;;  %v3699_v58 = vunpack.i.l.bf16 %v3698_v53  ;;  %v1590_v50 = vsel %vm1581_vm0, %v3669_v52, %v3670_v6  ;;  %v1645_v6 = vld [vmem:[#allocation7 + $0xe8] sm:$0xff] }
 0x3ac   :  { %2101 = vmatprep.mubr.f32.mxu1 %v1625_v40  ;;  %v3689_v61 = vunpack.i.l.bf16 %v5237_v20  ;;  %v3715_v47 = vunpack.i.h.bf16 %v3713_v16  ;;  %v3714_v21 = vunpack.i.l.bf16 %v3713_v16  ;;  %v1586_v30 = vsel %vm1581_vm0, %v3684_v34, %v3685_v60  ;;  %v1644_v40 = vld [vmem:[#allocation7 + $0xe0] sm:$0xff]  ;;  %v1655_v16 = vld [vmem:[#allocation7 + $0x138] sm:$0xff] }
 0x3ad   :  { %v2867_v18 = vpack.c.bf16 %v1482_v1, %v1481_v37  ;;  %v3720_v7 = vunpack.i.h.bf16 %v3718_v2  ;;  %v3719_v32 = vunpack.i.l.bf16 %v3718_v2  ;;  %v1589_v62 = vsel %vm1581_vm0, %v3659_v4, %v3660_v51  ;;  %v1624_v60 = vld [vmem:[#allocation7 + $0x40] sm:$0xff] }
 0x3ae   :  { %2840 = vmatpush3.bf16.msra.mxu0 %v2839_v12  ;;  %2864 = vmatpush3.bf16.msra.mxu1 %v2863_v43  ;;  %v3710_v20 = vunpack.i.h.bf16 %v5298_v28  ;;  %v3709_v8 = vunpack.i.l.bf16 %v5298_v28  ;;  %v1585_v54 = vsel %vm1581_vm0, %v3679_v17, %v3680_v22  ;;  %v2877_v12 = vpack.c.bf16 %v1590_v50, %v1589_v62  ;;  %v1656_v37 = vld [vmem:[#allocation7 + $0x140] sm:$0xff] }
 0x3af   :  { %2842 = vmatprep.subr.bf16.mxu0 %v2841_v38  ;;  %2866 = vmatprep.subr.bf16.mxu1 %v2865_v11  ;;  %v3728_v36 = vpop.permute.xlu0 %3727  ;;  %v3723_v10 = vpop.permute.xlu1 %3722  ;;  %v1484_v5 = vsel %vm1478_vm15, %v3699_v58, %v3700_v45  ;;  %v2869_v55 = vpack.c.bf16 %v1586_v30, %v1585_v54  ;;  %v1483_v57 = vsel %vm1478_vm15, %v3689_v61, %v3690_v19  ;;  %v1636_v22 = vld [vmem:[#allocation7 + $0xa0] sm:$0xff]  ;;  %v1635_v11 = vld [vmem:[#allocation7 + $0x98] sm:$0xff]  ;;  %v1626_v30 = vld [vmem:[#allocation7 + $0x50] sm:$0xff] }
 0x3b0   :  { %v3725_v15 = vunpack.i.h.bf16 %v3723_v10  ;;  %v3724_v43 = vunpack.i.l.bf16 %v3723_v10  ;;  %v1592_v24 = vsel %vm1581_vm0, %v3714_v21, %v3715_v47  ;;  %v3730_v0 = vunpack.i.h.bf16 %v3728_v36  ;;  %v1647_v61 = vld [vmem:[#allocation7 + $0xf8] sm:$0xff]  ;;  %v1657_v10 = vld [vmem:[#allocation7 + $0x148] sm:$0xff] }
 0x3b1   :  { %v3729_v41 = vunpack.i.l.bf16 %v3728_v36  ;;  %v1587_v33 = vsel %vm1581_vm0, %v3719_v32, %v3720_v7  ;;  %v2871_v13 = vpack.c.bf16 %v1484_v5, %v1483_v57  ;;  %v1591_v25 = vsel %vm1581_vm0, %v3709_v8, %v3710_v20  ;;  %v1646_v32 = vld [vmem:[#allocation7 + $0xf0] sm:$0xff]  ;;  %v1637_v54 = vld [vmem:[#allocation7 + $0xa8] sm:$0xff]  ;;  %v1659_v5 = vld [vmem:[#allocation7 + $0x158] sm:$0xff] }
 0x3b2   :  { %2844 = vmatpush3.bf16.msra.mxu0 %v2843_v35  ;;  %2868 = vmatpush3.bf16.msra.mxu1 %v2867_v18  ;;  %v1588_v42 = vsel %vm1581_vm0, %v3724_v43, %v3725_v15  ;;  %v2881_v14 = vpack.c.bf16 %v1592_v24, %v1591_v25  ;;  %v1658_v8 = vld [vmem:[#allocation7 + $0x150] sm:$0xff] }
 0x3b3   :  { %2870 = vmatprep.subr.bf16.mxu1 %v2869_v55  ;;  %2878 = vmatprep.subr.bf16.mxu0 %v2877_v12  ;;  %v3738_v3 = vpop.permute.xlu0 %3737  ;;  %v3733_v46 = vpop.permute.xlu1 %3732  ;;  %v2873_v49 = vpack.c.bf16 %v1588_v42, %v1587_v33  ;;  %v1485_v27 = vsel %vm1478_vm15, %v3729_v41, %v3730_v0 }
 0x3b4   :  { %v3735_v29 = vunpack.i.h.bf16 %v3733_v46  ;;  %v3734_v39 = vunpack.i.l.bf16 %v3733_v46  ;;  %v3740_v23 = vunpack.i.h.bf16 %v3738_v3  ;;  %v3739_v9 = vunpack.i.l.bf16 %v3738_v3 }
 0x3b5   :  { %2017 = vmatmul.mubr.f32.vlgmr.msra.gmra.mrb[34].mxu0 %v1622_v48 }
 0x3b6   :  { %2872 = vmatpush3.bf16.msra.mxu1 %v2871_v13  ;;  %2880 = vmatpush3.bf16.msra.mxu0 %v2877_v12  ;;  %v1486_v28 = vsel %vm1478_vm15, %v3734_v39, %v3735_v29  ;;  %v1593_v31 = vsel %vm1581_vm0, %v3739_v9, %v3740_v23  ;;  %v1648_v12 = vld [vmem:[#allocation7 + $0x100] sm:$0xff] }
 0x3b7   :  { %2874 = vmatprep.subr.bf16.mxu1 %v2873_v49  ;;  %2882 = vmatprep.subr.bf16.mxu0 %v2881_v14  ;;  %v2875_v53 = vpack.c.bf16 %v1486_v28, %v1485_v27  ;;  %v3748_v44 = vpop.permute.xlu0 %3747  ;;  %v3743_v56 = vpop.permute.xlu1 %3742 }
 0x3b8   :  { %2021 = vmatprep.mubr.f32.mxu0 %v1634_v26  ;;  %v3745_v52 = vunpack.i.h.bf16 %v3743_v56  ;;  %v3744_v63 = vunpack.i.l.bf16 %v3743_v56  ;;  %v3750_v34 = vunpack.i.h.bf16 %v3748_v44  ;;  %v3749_v38 = vunpack.i.l.bf16 %v3748_v44 }
 0x3b9   :  { %2022 = vmatmul.mubr.f32.gmra.mrb[36].mxu0 %v1633_v59 }
 0x3ba   :  { %2876 = vmatpush3.bf16.msra.mxu1 %v2875_v53  ;;  %2884 = vmatpush3.bf16.msra.mxu0 %v2881_v14  ;;  %v1594_v35 = vsel %vm1581_vm0, %v3744_v63, %v3745_v52  ;;  %v1595_v58 = vsel %vm1581_vm0, %v3749_v38, %v3750_v34 }
 0x3bb   :  { %2026 = vmatprep.mubr.f32.mxu0 %v1645_v6  ;;  %v3758_v51 = vpop.permute.xlu0 %3757  ;;  %v3753_v4 = vpop.permute.xlu1 %3752  ;;  %v2885_v1 = vpack.c.bf16 %v1594_v35, %v1593_v31 }
 0x3bc   :  { %v3755_v17 = vunpack.i.h.bf16 %v3753_v4  ;;  %v3754_v2 = vunpack.i.l.bf16 %v3753_v4  ;;  %v3760_v19 = vunpack.i.h.bf16 %v3758_v51  ;;  %v3759_v45 = vunpack.i.l.bf16 %v3758_v51 }
 0x3bd   :  { %2027 = vmatmul.mubr.f32.gmra.mrb[38].mxu0 %v1644_v40  ;;  %2102 = vmatmul.mubr.f32.vlgmr.msra.gmra.mrb[24].mxu1 %v1624_v60 }
 0x3be   :  { %2886 = vmatprep.subr.bf16.mxu0 %v2885_v1  ;;  %2031 = vmatprep.mubr.f32.mxu0 %v1656_v37  ;;  %v1596_v50 = vsel %vm1581_vm0, %v3754_v2, %v3755_v17  ;;  %v1597_v62 = vsel %vm1581_vm0, %v3759_v45, %v3760_v19 }
 0x3bf   :  { %2888 = vmatpush3.bf16.msra.mxu0 %v2885_v1  ;;  %2106 = vmatprep.mubr.f32.mxu1 %v1636_v22  ;;  %v3763_v47 = vpop.permute.xlu1 %3762  ;;  %v2889_v21 = vpack.c.bf16 %v1596_v50, %v1595_v58 }
 0x3c0   :  { %v3765_v18 = vunpack.i.h.bf16 %v3763_v47  ;;  %v3764_v7 = vunpack.i.l.bf16 %v3763_v47 }
 0x3c1   :  { %2032 = vmatmul.mubr.f32.gmra.mrb[40].mxu0 %v1655_v16  ;;  %2107 = vmatmul.mubr.f32.gmra.mrb[26].mxu1 %v1635_v11 }
 0x3c2   :  { %2890 = vmatprep.subr.bf16.mxu0 %v2889_v21  ;;  %2111 = vmatprep.mubr.f32.mxu1 %v1647_v61  ;;  %v1598_v20 = vsel %vm1581_vm0, %v3764_v7, %v3765_v18 }
 0x3c3   :  { %2892 = vmatpush3.bf16.msra.mxu0 %v2889_v21  ;;  %2684 = vmatprep.mubr.msk.f32.mxu0 %vm1684_vm1, %v1626_v30  ;;  %v2893_v36 = vpack.c.bf16 %v1598_v20, %v1597_v62  ;;  %v2210_v20 = vlaneseq }
 0x3c5   :  { %2112 = vmatmul.mubr.f32.gmra.mrb[28].mxu1 %v1646_v32  ;;  %2894 = vmatprep.subr.bf16.mxu0 %v2893_v36 }
 0x3c6   :  { %2116 = vmatprep.mubr.f32.mxu1 %v1658_v8 }
 0x3c7   :  { %2896 = vmatpush3.bf16.msra.mxu0 %v2893_v36 }
 0x3c9   :  { %2117 = vmatmul.mubr.f32.gmra.mrb[30].mxu1 %v1657_v10  ;;  %v2207_v10 = vld [vmem:[%s5401_s7] sm:$0x1]  ;;  %s3863_s7 = smov 106  }
 0x3ca   :  { %2685 = vmatmul.mubr.msk.f32.vlgmr.msra.gmra.mrb[42].mxu0 %vm1684_vm1, %v1637_v54  ;;  %vm2208_vm2 = vcmp.gt.f32.partialorder %v2207_v10, 0.5 }
 0x3cb   :  { %2687 = vmatprep.mubr.msk.f32.mxu0 %vm1684_vm1, %v1648_v12 }
 0x3cc   :  { %v1672_v46 = vpop.permute.xlu0 %1671 }
 0x3ce   :  { %2688 = vmatmul.mubr.msk.f32.gmra.mrb[44].mxu0 %vm1684_vm1, %v1659_v5 }
 0x3d0   :  { %v1667_v25 = vpop.permute.xlu0 %1666  ;;  %v1677_v28 = vpop.permute.xlu1 %1676 }
 0x3d4   :  { %v1682_v60 = vpop.permute.xlu1 %1681 }
 0x41d   :  { %v2462_v15 = vpop.f32.mrb[0].mxu1 }
 0x41e   :  { %v2463_v43 = vpop.f32.mrb[1].mxu1 }
 0x41f   :  { %v2464_v55 = vadd.f32 %v2463_v43, %v2462_v15  ;;  %v5354_v15 = vshrl.u32 %v2210_v20, 7 }
 0x421   :  { %v2465_v57 = vpop.f32.mrb[2].mxu1  ;;  %v1764_v39 = vadd.f32 %v2464_v55, %v1667_v25 }
 0x422   :  { %v2466_v48 = vpop.f32.mrb[3].mxu1 }
 0x423   :  { %v2467_v24 = vadd.f32 %v2466_v48, %v2465_v57 }
 0x425   :  { %v2468_v0 = vpop.f32.mrb[4].mxu1  ;;  %v1769_v23 = vadd.f32 %v2467_v24, %v1672_v46  ;;  %v5531_v46 = vmov 0  }
 0x426   :  { %v2469_v41 = vpop.f32.mrb[5].mxu1 }
 0x427   :  { %v2470_v33 = vadd.f32 %v2469_v41, %v2468_v0 }
 0x429   :  { %v2471_v42 = vpop.f32.mrb[6].mxu1  ;;  %v1774_v6 = vadd.f32 %v2470_v33, %v1677_v28 }
 0x42a   :  { %v2472_v13 = vpop.f32.mrb[7].mxu1 }
 0x42b   :  { %v2473_v3 = vadd.f32 %v2472_v13, %v2471_v42  ;;  %v2212_v42 = vsub.s32 0, %v5354_v15 }
 0x42d   :  { %v1779_v38 = vadd.f32 %v2473_v3, %v1682_v60 }
 0x44f   :  { %v2506_v49 = vpop.f32.mrb[8].mxu1 }
 0x450   :  { %v2507_v29 = vpop.f32.mrb[9].mxu1 }
 0x451   :  { %v2508_v14 = vadd.f32 %v2507_v29, %v2506_v49  ;;  %v2209_v49 = vsel %vm2208_vm2, 1, %v5531_v46  ;;  %v2323_v46 = vld [vmem:[%s5399_s5] sm:$0xf]  ;;  %s3869_s5 = smov [#allocation9]  }
 0x453   :  { %v1849_v26 = vadd.f32 %v2508_v14, %v1764_v39  ;;  %v2509_v59 = vpop.f32.mrb[10].mxu1 }
 0x454   :  { %v2510_v27 = vpop.f32.mrb[11].mxu1 }
 0x455   :  { %v2511_v9 = vadd.f32 %v2510_v27, %v2509_v59  ;;  %v2213_v59 = vrot.slane %v2209_v49, %v2212_v42  ;;  %v2322_v42 = vld [vmem:[%s5400_s6] sm:$0xf]  ;;  %v3864_v49 = vmov 1   ;;  %s2397_s6 = sshll.u32 %s3869_s5, 4  ;;  %s2398_s6 = int_to_ptr.vmem [resolvable:$true] %s2397_s6 }
 0x456   :  { %s3815_s29 = scalar_lea.vmem %s2398_s6, 64  ;;  %p3820_p3 = scmp.lt.s32.totalorder %s2398_s6, %s2398_s6 }
 0x457   :  { %v1854_v53 = vadd.f32 %v2511_v9, %v1769_v23  ;;  %v2512_v44 = vpop.f32.mrb[12].mxu1  ;;  %vm2214_vm3 = vcmp.eq.s32.totalorder %v2213_v59, 1  ;;  %p3816_p2 = scmp.ne.s32.totalorder %s2398_s6, %s3815_s29  ;;  %p3821_p4 = scmp.lt.s32.totalorder %s3815_s29, %s3815_s29 }
 0x458   :  { %v2513_v56 = vpop.f32.mrb[13].mxu1 }
 0x459   :  { %v2514_v52 = vadd.f32 %v2513_v56, %v2512_v44  ;;  %p3822_p5 = por %p3821_p4, %p3820_p3 }
 0x45b   :  { %v1859_v63 = vadd.f32 %v2514_v52, %v1774_v6  ;;  %v2515_v40 = vpop.f32.mrb[14].mxu1  ;;  %p3823_p6 = pnand %p3822_p5, %p3816_p2 }
 0x45c   :  { %v2516_v34 = vpop.f32.mrb[15].mxu1 }
 0x45d   :  { %v2517_v31 = vadd.f32 %v2516_v34, %v2515_v40 }
 0x45f   :  { %v1864_v35 = vadd.f32 %v2517_v31, %v1779_v38 }
 0x470   :  { %v2550_v37 = vpop.f32.mrb[16].mxu1 }
 0x471   :  { %v2551_v51 = vpop.f32.mrb[17].mxu1 }
 0x472   :  { %v2552_v4 = vadd.f32 %v2551_v51, %v2550_v37 }
 0x474   :  { %v1934_v1 = vadd.f32 %v2552_v4, %v1849_v26  ;;  %v2553_v22 = vpop.f32.mrb[18].mxu1 }
 0x475   :  { %v2554_v17 = vpop.f32.mrb[19].mxu1 }
 0x476   :  { %v2555_v2 = vadd.f32 %v2554_v17, %v2553_v22 }
 0x478   :  { %v1939_v16 = vadd.f32 %v2555_v2, %v1854_v53  ;;  %v2556_v11 = vpop.f32.mrb[20].mxu1 }
 0x479   :  { %v2557_v19 = vpop.f32.mrb[21].mxu1 }
 0x47a   :  { %v2558_v45 = vadd.f32 %v2557_v19, %v2556_v11 }
 0x47c   :  { %v1944_v58 = vadd.f32 %v2558_v45, %v1859_v63  ;;  %v2559_v50 = vpop.f32.mrb[22].mxu1 }
 0x47d   :  { %v2560_v61 = vpop.f32.mrb[23].mxu1 }
 0x47e   :  { %v2561_v47 = vadd.f32 %v2560_v61, %v2559_v50 }
 0x480   :  { %v1949_v21 = vadd.f32 %v2561_v47, %v1864_v35 }
 0x488   :  { %v2594_v30 = vpop.f32.mrb[34].mxu0 }
 0x489   :  { %v2595_v18 = vpop.f32.mrb[35].mxu0 }
 0x48a   :  { %v2596_v7 = vadd.f32 %v2595_v18, %v2594_v30 }
 0x48c   :  { %v2019_v32 = vadd.f32 %v2596_v7, %v1934_v1  ;;  %v2597_v62 = vpop.f32.mrb[36].mxu0 }
 0x48d   :  { %v2598_v8 = vpop.f32.mrb[37].mxu0 }
 0x48e   :  { %v2599_v36 = vadd.f32 %v2598_v8, %v2597_v62 }
 0x490   :  { %v2024_v54 = vadd.f32 %v2599_v36, %v1939_v16  ;;  %v2600_v12 = vpop.f32.mrb[38].mxu0  ;;  %v2638_v5 = vpop.f32.mrb[24].mxu1 }
 0x491   :  { %v2601_v43 = vpop.f32.mrb[39].mxu0  ;;  %v2639_v55 = vpop.f32.mrb[25].mxu1 }
 0x492   :  { %v2602_v57 = vadd.f32 %v2601_v43, %v2600_v12  ;;  %v2640_v48 = vadd.f32 %v2639_v55, %v2638_v5 }
 0x494   :  { %v2029_v24 = vadd.f32 %v2602_v57, %v1944_v58  ;;  %v2603_v0 = vpop.f32.mrb[40].mxu0  ;;  %v2641_v41 = vpop.f32.mrb[26].mxu1  ;;  %v2104_v33 = vadd.f32 %v2640_v48, %v2019_v32 }
 0x495   :  { %v2604_v13 = vpop.f32.mrb[41].mxu0  ;;  %v2642_v3 = vpop.f32.mrb[27].mxu1 }
 0x496   :  { %v2605_v25 = vadd.f32 %v2604_v13, %v2603_v0  ;;  %v2643_v29 = vadd.f32 %v2642_v3, %v2641_v41 }
 0x498   :  { %v2034_v39 = vadd.f32 %v2605_v25, %v1949_v21  ;;  %v2644_v14 = vpop.f32.mrb[28].mxu1  ;;  %v2109_v26 = vadd.f32 %v2643_v29, %v2024_v54  ;;  %v3865_v25 = vmov 2   ;;  %v3866_v29 = vmov 3  }
 0x499   :  { %v2645_v27 = vpop.f32.mrb[29].mxu1 }
 0x49a   :  { %v2646_v23 = vadd.f32 %v2645_v27, %v2644_v14  ;;  %v3867_v14 = vmov 1983009808  }
 0x49c   :  { %v2647_v9 = vpop.f32.mrb[30].mxu1  ;;  %v2114_v28 = vadd.f32 %v2646_v23, %v2029_v24 }
 0x49d   :  { %v2648_v53 = vpop.f32.mrb[31].mxu1  ;;  %v2686_v44 = vpop.f32.mrb[42].mxu0 }
 0x49e   :  { %v2649_v56 = vadd.f32 %v2648_v53, %v2647_v9  ;;  %v2194_v6 = vadd.f32 %v2686_v44, %v2109_v26  ;;  %v2188_v52 = vpop.f32.mrb[43].mxu0  ;;  %v2277_v26 = vunpack.c.l.s4 %v3867_v14  ;;  %v3868_v9 = vmov 1934713408  }
 0x49f   :  { %v2189_v63 = vadd.f32 %v2188_v52, %v2104_v33 }
 0x4a0   :  { %v2216_v40 = vsel %vm2214_vm3, %v2194_v6, -inf  ;;  %v2119_v60 = vadd.f32 %v2649_v56, %v2034_v39  ;;  %v2278_v23 = vunpack.c.0.s8 %v2277_v26 }
 0x4a1   :  { %v2227_v34 = vsel %vm2219_vm4, %v2216_v40, -inf  ;;  %v2215_v38 = vsel %vm2214_vm3, %v2189_v63, -inf  ;;  %v2689_v31 = vpop.f32.mrb[44].mxu0 }
 0x4a2   :  { %v2228_v35 = vrot.slane %v2227_v34, 4  ;;  %v2220_v37 = vsel %vm2219_vm4, %v2215_v38, -inf  ;;  %v2204_v51 = vadd.f32 %v2689_v31, %v2119_v60  ;;  %v2198_v4 = vpop.f32.mrb[45].mxu0  ;;  %v2281_v6 = vsub.s32 %v2278_v23, %v5354_v15 }
 0x4a3   :  { %v2221_v1 = vrot.slane %v2220_v37, 4  ;;  %v2199_v22 = vadd.f32 %v2198_v4, %v2114_v28  ;;  %v2294_v28 = vunpack.c.l.s4 %v3868_v9 }
 0x4a4   :  { %v2229_v17 = vmax.f32 %v2227_v34, %v2228_v35  ;;  %v2218_v2 = vsel %vm2214_vm3, %v2204_v51, -inf }
 0x4a5   :  { %v2222_v16 = vmax.f32 %v2220_v37, %v2221_v1  ;;  %v2241_v11 = vsel %vm2219_vm4, %v2218_v2, -inf  ;;  %v2217_v19 = vsel %vm2214_vm3, %v2199_v22, -inf  ;;  %v2295_v63 = vunpack.c.0.s8 %v2294_v28  ;;  %v3770_v22 = vld [vmem:[#allocation2 + $0x8] sm:$0xff] }
 0x4a6   :  { %v2230_v45 = vrot.slane %v2229_v17, 2  ;;  %v2242_v58 = vrot.slane %v2241_v11, 4  ;;  %v2234_v50 = vsel %vm2219_vm4, %v2217_v19, -inf }
 0x4a7   :  { %v2223_v61 = vrot.slane %v2222_v16, 2  ;;  %v2235_v47 = vrot.slane %v2234_v50, 4  ;;  %v2298_v35 = vsub.s32 %v2295_v63, %v5354_v15 }
 0x4a8   :  { %v2231_v21 = vmax.f32 %v2229_v17, %v2230_v45  ;;  %v2243_v30 = vmax.f32 %v2241_v11, %v2242_v58  ;;  %v2331_v58 = vand.u32 127, %v2210_v20 }
 0x4a9   :  { %v2224_v18 = vmax.f32 %v2222_v16, %v2223_v61  ;;  %v2236_v7 = vmax.f32 %v2234_v50, %v2235_v47 }
 0x4aa   :  { %v2232_v32 = vrot.slane %v2231_v21, 1  ;;  %v2244_v62 = vrot.slane %v2243_v30, 2  ;;  %v2334_v47 = vsub.s32 %v2331_v58, %v5354_v15 }
 0x4ab   :  { %v2225_v8 = vrot.slane %v2224_v18, 1  ;;  %v2237_v36 = vrot.slane %v2236_v7, 2 }
 0x4ac   :  { %v2245_v10 = vmax.f32 %v2243_v30, %v2244_v62  ;;  %v2233_v54 = vmax.f32 %v2231_v21, %v2232_v32 }
 0x4ad   :  { %v2238_v12 = vmax.f32 %v2236_v7, %v2237_v36  ;;  %v2226_v5 = vmax.f32 %v2224_v18, %v2225_v8 }
 0x4ae   :  { %v2246_v43 = vrot.slane %v2245_v10, 1  ;;  %v2260_v55 = vrot.slane %v2233_v54, 7 }
 0x4af   :  { %v2239_v57 = vrot.slane %v2238_v12, 1  ;;  %2252 = vrot.lane.b32.xlu0 %v2226_v5, %s3863_s7 }
 0x4b0   :  { %v2247_v48 = vmax.f32 %v2245_v10, %v2246_v43  ;;  %v2262_v24 = vsel %vm2261_vm5, %v2260_v55, %v2226_v5 }
 0x4b1   :  { %v2240_v0 = vmax.f32 %v2238_v12, %v2239_v57 }
 0x4b2   :  { %v2266_v33 = vrot.slane %v2247_v48, 5 }
 0x4b3   :  { %2256 = vrot.lane.b32.xlu1 %v2240_v0, %s3863_s7  ;;  %v2263_v41 = vrot.slane %v2240_v0, 6  ;;  %2254 = vrot.lane.b32.xlu0 %v2233_v54, %s3863_s7 }
 0x4b5   :  { %v2265_v13 = vsel %vm2264_vm6, %v2263_v41, %v2262_v24 }
 0x4b6   :  { %v2268_v3 = vsel %vm2267_vm7, %v2266_v33, %v2265_v13 }
 0x4b7   :  { %2258 = vrot.lane.b32.xlu1 %v2247_v48, %s3863_s7  ;;  %2342 = vperm.xlu0 %3000, %v2322_v42   ;;  %v2282_v31 = vrot.slane %v2268_v3, %v2281_v6 }
 0x4bb   :  { %2326 = vperm.xlu1 %2999, %v2323_v46   ;;  %3768 = vset.pattern.permute.xlu0 %v3866_v29 }
 0x4bf   :  { %3766 = vset.pattern.permute.xlu1 %v3864_v49 }
 0x4c0   :  { %2347 = vperm.xlu1 %3766, %v2323_v46  }
 0x4c4   :  { %3767 = vset.pattern.permute.xlu1 %v3865_v25 }
 0x521   :  { %v2253_v39 = vpop.permute.xlu0 %2252 }
 0x525   :  { %v2257_v59 = vpop.permute.xlu1 %2256  ;;  %v2255_v27 = vpop.permute.xlu0 %2254 }
 0x526   :  { %v2269_v53 = vrot.slane %v2255_v27, 7  ;;  %v2271_v44 = vrot.slane %v2257_v59, 6 }
 0x528   :  { %v2270_v56 = vsel %vm2261_vm5, %v2269_v53, %v2253_v39 }
 0x529   :  { %v2259_v52 = vpop.permute.xlu1 %2258  ;;  %v2272_v60 = vsel %vm2264_vm6, %v2271_v44, %v2270_v56 }
 0x52a   :  { %v2273_v40 = vrot.slane %v2259_v52, 5 }
 0x52c   :  { %v2274_v34 = vsel %vm2267_vm7, %v2273_v40, %v2272_v60 }
 0x52d   :  { %v2290_v38 = vrot.slane %v2274_v34, %v2281_v6 }
 0x52f   :  { %v2291_v37 = vcombine.low %v2282_v31, %v2290_v38  ;;  %v2292_v51 = vcombine.high %v2282_v31, %v2290_v38 }
 0x531   :  { %v2299_v4 = vrot.slane %v2291_v37, %v2298_v35  ;;  %v2306_v2 = vrot.slane %v2292_v51, %v2298_v35 }
 0x533   :  { %v2310_v1 = vsel %vm2309_vm8, %v2299_v4, -inf  ;;  %v2307_v17 = vcombine.high %v2299_v4, %v3770_v22  ;;  %v2316_v11 = vsel %vm2309_vm8, %v2306_v2, -inf  ;;  %v2308_v19 = vcombine.high %v2306_v2, %v3770_v22 }
 0x534   :  { %2311 = vmax.xlane.f32.xlu0 %v2310_v1 }
 0x535   :  { %v2313_v16 = vsel %vm2309_vm8, %v2307_v17, -inf  ;;  %v2319_v45 = vsel %vm2309_vm8, %v2308_v19, -inf }
 0x536   :  { %2314 = vmax.xlane.f32.xlu1 %v2313_v16  ;;  %v2343_v61 = vpop.permute.xlu0 %2342 }
 0x538   :  { %2317 = vmax.xlane.f32.xlu0 %v2316_v11 }
 0x53a   :  { %v2327_v50 = vpop.permute.xlu1 %2326 }
 0x53c   :  { %2320 = vmax.xlane.f32.xlu0 %v2319_v45 }
 0x53f   :  { %v2348_v21 = vpop.permute.xlu1 %2347 }
 0x547   :  { %2361 = vperm.xlu1 %3767, %v2323_v46  }
 0x552   :  { %2375 = vperm.xlu0 %3768, %v2323_v46  }
 0x5c1   :  { %v2312_v30 = vpop.xlane.xlu0 %2311 }
 0x5c2   :  { %v2335_v18 = vrot.slane %v2312_v30, %v2334_v47 }
 0x5c3   :  { %v2315_v7 = vpop.xlane.xlu1 %2314 }
 0x5c4   :  { %v2339_v32 = vmul.f32 %v2335_v18, %v2327_v50  ;;  %v2354_v62 = vrot.slane %v2315_v7, %v2334_v47 }
 0x5c5   :  { %v2318_v8 = vpop.xlane.xlu0 %2317 }
 0x5c6   :  { %v2345_v36 = vadd.f32 %v2343_v61, %v2339_v32  ;;  %v2358_v10 = vmul.f32 %v2354_v62, %v2348_v21  ;;  %v2368_v54 = vrot.slane %v2318_v8, %v2334_v47 }
 0x5c7   :  { %v2362_v12 = vpop.permute.xlu1 %2361 }
 0x5c8   :  { %v2359_v43 = vadd.f32 %v2358_v10, %v2345_v36  ;;  %v2372_v55 = vmul.f32 %v2368_v54, %v2362_v12 }
 0x5c9   :  { %v2321_v5 = vpop.xlane.xlu0 %2320 }
 0x5ca   :  { %v2382_v57 = vrot.slane %v2321_v5, %v2334_v47  ;;  %v2373_v48 = vadd.f32 %v2372_v55, %v2359_v43 }
 0x5d1   :  { %v2376_v20 = vpop.permute.xlu0 %2375 }
 0x5d2   :  { %v2386_v15 = vmul.f32 %v2382_v57, %v2376_v20 }
 0x5d4   :  { %v2387_v24 = vadd.f32 %v2386_v15, %v2373_v48 }
 0x5d6   :  { %2390 = vst.msk [vmem:[#allocation9] sm:$0xf] %vm2389_vm9, %v2387_v24 }
 0x5d7   :  { %3826 = shalt.err (!%p3823_p6)
}
 0x5d8   :  { %s3827_s30 = scalar_lea.hbm %s5402_s8, 64 }
 0x5d9   :  { %p3828_p7 = scmp.ne.s32.totalorder %s5402_s8, %s3827_s30  ;;  %p3831_p8 = scmp.lt.u32.totalorder %s3827_s30, %s5402_s8 }
 0x5db   :  { %p3833_p9 = pnand %p3831_p8, %p3828_p7 }
 0x5dd   :  { %3836 = shalt.err (!%p3833_p9)
}
 0x5de   :  { %2400 = dma.vmem_to_hbm [thread:$0]  %s2398_s6, 64, %s5402_s8, [#allocation6]  }
 0x5df   :  { %3841 = dma.done.wait [#allocation6], 64  }
 0x5e0   :  { %3842 = vsyncadd [#allocation6], 4294967232 }
 0x5e1   :  { %2404 = vsyncpa [#allocation5], 1 }
 0x5e2   :  { %2405 = vsyncpa [#allocation8], 1 }
 0x5e3   :  { %2406 = vsyncpa [#allocation6], 1 }

</bundles_post_ra>
